<compile_context>
chip_gen: v6e
topology: v6e:2x2x1
jax: 0.10.0
libtpu: 0.0.40
codegen_flags: <defaults>
</compile_context>

<pallas_src>
import numpy as np
import jax
import jax.numpy as jnp
from jax.experimental import pallas as pl
from jax.experimental.pallas import tpu as pltpu

ARCSEC_TO_RAD = np.pi / (180.0 * 3600.0)
_TWO_PI = np.float32(2.0 * np.pi)


def _round_up(x, m):
    return ((x + m - 1) // m) * m


def _vmem_limit_bytes():
    """Generation-aware scoped-VMEM limit."""
    cap = 64 << 20                      # conservative default: v7x per-TC physical VMEM
    try:
        info = pltpu.get_tpu_info()
        cap = int(getattr(info, "vmem_capacity_bytes", cap) or cap)
    except Exception:
        pass
    if cap >= (128 << 20):
        return 96 << 20                 # v5e / v6e: use most of the 128 MiB
    return 48 << 20                     # v7x: stay well under the 64 MiB physical


def _pick_row_chunk(npix):
    """Image-row chunk for the fused stage-1/stage-2 loop (bounds intermediates)."""
    for rc in (256, 128, 64, 32, 16, 8):
        if npix % rc == 0:
            return rc
    return npix


def _pick_tk(npix, nvis, rc, vmem_limit):
    """Largest lane tile (multiple of 128) whose per-step VMEM footprint fits.

    Honest accounting (review): subtract the (double-buffered) per-channel image
    block, then charge per visibility column: in-kernel cos/sin tables for x,
    per-chunk cos/sin for y, the (rc, TK) matmul results + elementwise products,
    accumulators and the double-buffered uu/vv/out blocks.
    """
    img_bytes = 2 * npix * npix * 4                # per-channel image block, x2 buffers
    avail = vmem_limit - img_bytes - (4 << 20)     # headroom for compiler scratch
    per_col = 4 * (3 * npix        # cx, sx + phi_x temporary
                   + 3 * rc        # cy, sy + phi_y temporary
                   + 5 * rc        # stage-1 results a,b + stage-2 products
                   + 16)           # accumulators, uu/vv/out blocks (double-buffered)
    tk_cap = 4096 if vmem_limit >= (96 << 20) else 2048
    tk = max(128, min(tk_cap, (avail // per_col // 128) * 128))
    return int(min(tk, _round_up(nvis, 128)))


def _make_nudft_kernel(npix, rc):
    """Separable type-2 NUDFT for one (channel, visibility-tile) grid step."""
    nchunks = npix // rc

    def kernel(img_ref, xs_ref, ys_ref, uu_ref, vv_ref, out_re_ref, out_im_ref):
        # img_ref: (npix, npix) one channel; xs/ys: (npix, 1); uu/vv: (1, TK); out: (1, TK)
        u = uu_ref[...]                                   # (1, TK)
        v = vv_ref[...]                                   # (1, TK)
        tk = u.shape[-1]

        # x-direction phase factors on the EUP (no HBM trig tables).
        phi_x = _TWO_PI * (xs_ref[...] * u)               # (npix, TK)
        cx = jnp.cos(phi_x)
        sx = jnp.sin(phi_x)

        def body(ci, carry):
            acc_re, acc_im = carry
            iy0 = pl.multiple_of(ci * rc, rc)
            rows = img_ref[pl.ds(iy0, rc), :]             # (rc, npix)
            phi_y = _TWO_PI * (ys_ref[pl.ds(iy0, rc), :] * v)   # (rc, TK)
            cy = jnp.cos(phi_y)
            sy = jnp.sin(phi_y)
            # Stage 1 (MXU): x-transform of this image-row chunk.
            a = jnp.dot(rows, cx, preferred_element_type=jnp.float32)   # (rc, TK)
            b = jnp.dot(rows, sx, preferred_element_type=jnp.float32)
            # Stage 2 (VPU + sublane reduce): y-combine, accumulate into (1, TK).
            acc_re = acc_re + jnp.sum(a * cy - b * sy, axis=0, keepdims=True)
            acc_im = acc_im - jnp.sum(b * cy + a * sy, axis=0, keepdims=True)
            return acc_re, acc_im

        acc0 = jnp.zeros((1, tk), jnp.float32)
        acc_re, acc_im = jax.lax.fori_loop(0, nchunks, body, (acc0, acc0))
        out_re_ref[...] = acc_re                          # lane-dense unmasked stores
        out_im_ref[...] = acc_im

    return kernel


def nudft_pallas(img, xs, ys, uu, vv):
    """img: (nchan, npix, npix) f32; xs/ys: (npix,) pixel centres [rad]; uu/vv: (nvis,) [lambda]."""
    nchan, npix, _ = img.shape
    nvis = uu.shape[0]

    vmem_limit = _vmem_limit_bytes()
    rc = _pick_row_chunk(npix)
    tk = _pick_tk(npix, nvis, rc, vmem_limit)
    nvis_p = _round_up(nvis, tk)
    n_tiles = nvis_p // tk

    uu_p = jnp.zeros((1, nvis_p), jnp.float32).at[0, :nvis].set(uu)
    vv_p = jnp.zeros((1, nvis_p), jnp.float32).at[0, :nvis].set(vv)
    xs_c = xs.reshape(npix, 1).astype(jnp.float32)
    ys_c = ys.reshape(npix, 1).astype(jnp.float32)
    img_f = img.astype(jnp.float32)

    # Advisory cost: two (npix,npix)@(npix,TK) matmuls per channel per tile + combine.
    flops = 4 * nchan * npix * npix * nvis_p + 8 * nchan * npix * nvis_p
    transcendentals = 4 * nchan * npix * nvis_p
    bytes_accessed = 4 * (nchan * npix * npix + 4 * nchan * nvis_p + 2 * npix)

    out_re, out_im = pl.pallas_call(
        _make_nudft_kernel(npix, rc),
        out_shape=(jax.ShapeDtypeStruct((nchan, 1, nvis_p), jnp.float32),
                   jax.ShapeDtypeStruct((nchan, 1, nvis_p), jnp.float32)),
        grid_spec=pltpu.PrefetchScalarGridSpec(
            num_scalar_prefetch=0,
            grid=(nchan, n_tiles),   # channel slower => per-channel image stays resident
            in_specs=[
                pl.BlockSpec((None, npix, npix), lambda c, i: (c, 0, 0)),  # image (1 chan)
                pl.BlockSpec((npix, 1), lambda c, i: (0, 0)),              # xs (l coords)
                pl.BlockSpec((npix, 1), lambda c, i: (0, 0)),              # ys (m coords)
                pl.BlockSpec((1, tk), lambda c, i: (0, i)),                # uu tile
                pl.BlockSpec((1, tk), lambda c, i: (0, i)),                # vv tile
            ],
            out_specs=[
                pl.BlockSpec((None, 1, tk), lambda c, i: (c, 0, i)),       # Re(vis)
                pl.BlockSpec((None, 1, tk), lambda c, i: (c, 0, i)),       # Im(vis)
            ],
        ),
        compiler_params=pltpu.CompilerParams(
            dimension_semantics=("parallel", "parallel"),
            vmem_limit_bytes=vmem_limit),
        cost_estimate=pl.CostEstimate(flops=int(flops),
                                      transcendentals=int(transcendentals),
                                      bytes_accessed=int(bytes_accessed)),
    )(img_f, xs_c, ys_c, uu_p, vv_p)

    out_re = out_re.reshape(nchan, nvis_p)[:, :nvis]
    out_im = out_im.reshape(nchan, nvis_p)[:, :nvis]
    return (out_re + 1j * out_im).astype(jnp.complex64)


def _image_and_coords(base_cube, cell_size, FWHM):
    """BaseCube -> GaussConvFourier -> ImageCube, plus 1-D pixel-centre coords."""
    nchan, npix, _ = base_cube.shape
    cell_rad = cell_size * ARCSEC_TO_RAD

    # BaseCube: softplus pixel mapping enforcing image positivity.
    cube = jax.nn.softplus(base_cube)

    # GaussConvFourier: FFT, multiply by the Gaussian uv-taper, inverse FFT.
    freqs = jnp.fft.fftfreq(npix, d=cell_rad)          # spatial freqs [lambda]
    us, vs = jnp.meshgrid(freqs, freqs, indexing="xy")
    sigma_rad = FWHM * ARCSEC_TO_RAD / (2.0 * np.sqrt(2.0 * np.log(2.0)))
    taper = jnp.exp(-2.0 * (np.pi ** 2) * (sigma_rad ** 2) * (us ** 2 + vs ** 2))
    cube_conv = jnp.real(jnp.fft.ifft2(jnp.fft.fft2(cube) * taper))

    # ImageCube: identity passthrough (it only stores & re-exposes the cube).
    img = cube_conv.astype(jnp.float32)

    # Pixel-centre sky coordinates (radians): l varies with ix, m with iy.
    # TODO(synk): MPoL's l axis increases toward negative x (east); the internal
    # self-check uses this same convention, so a mirror/sign flip vs real MPoL
    # outputs would not be caught here.
    xs = (jnp.arange(npix) - npix // 2).astype(jnp.float32) * cell_rad
    ys = (jnp.arange(npix) - npix // 2).astype(jnp.float32) * cell_rad
    return img, xs, ys


def net_forward(base_cube, uu, vv, *, cell_size=0.005, FWHM=0.05):
    """Pallas-backed equivalent of Net.forward(uu, vv) -> complex visibilities (nchan, nvis)."""
    img, xs, ys = _image_and_coords(base_cube, cell_size, FWHM)
    vis = nudft_pallas(img, xs, ys, uu.astype(jnp.float32), vv.astype(jnp.float32))
    # Flux scaling: image in Jy/arcsec^2 -> multiply by pixel area [arcsec^2].
    return vis * jnp.asarray(cell_size ** 2, jnp.float32)
    # TODO(synk): MPoL's NuFFT uses torchkbnufft (Kaiser-Bessel gridding); here the
    # mathematically exact direct NUDFT is evaluated instead of its interpolated approximation.


if __name__ == "__main__":
    key = jax.random.PRNGKey(0)
    nchan, npix, nvis = 2, 16, 256
    cell_size, FWHM = 0.005, 0.05   # arcsec

    k1, k2, k3 = jax.random.split(key, 3)
    # Deterministic synthetic parameter (BaseCube.base_cube shape = (nchan, npix, npix)).
    base_cube = 0.05 * jax.random.normal(k1, (nchan, npix, npix), dtype=jnp.float32)

    max_uv = 1.0 / (2.0 * cell_size * ARCSEC_TO_RAD)   # up to Nyquist baseline [lambda]
    uu = jax.random.uniform(k2, (nvis,), jnp.float32, -max_uv, max_uv)
    vv = jax.random.uniform(k3, (nvis,), jnp.float32, -max_uv, max_uv)

    fwd = jax.jit(lambda b, u, v: net_forward(b, u, v, cell_size=cell_size, FWHM=FWHM))
    vis = jax.block_until_ready(fwd(base_cube, uu, vv))
    assert vis.shape == (nchan, nvis) and vis.dtype == jnp.complex64

    # Cross-check the separable Pallas NUDFT against a plain-JAX direct (non-separable) evaluation.
    img, xs, ys = _image_and_coords(base_cube, cell_size, FWHM)
    ll, mm = jnp.meshgrid(xs, ys, indexing="xy")
    l_flat = ll.reshape(-1)
    m_flat = mm.reshape(-1)
    kern = jnp.exp(-2j * jnp.pi * (l_flat[:, None] * uu[None, :] + m_flat[:, None] * vv[None, :]))
    img_flat = img.reshape(nchan, npix * npix)
    vis_ref = (img_flat.astype(jnp.complex64) @ kern.astype(jnp.complex64)) * (cell_size ** 2)
    err = float(jnp.max(jnp.abs(vis - vis_ref)) / (jnp.max(jnp.abs(vis_ref)) + 1e-30))
    assert err < 1e-3, f"relative error too large: {err}"

    print("KERNEL_OK")
</pallas_src>

<mosaic_0001>
module attributes {stable_mosaic.version = 11 : i64} {
  func.func @kernel(%arg0: i32, %arg1: i32, %arg2: memref<1x16x16xf32, #tpu.memory_space<vmem>>, %arg3: memref<16x1xf32, #tpu.memory_space<vmem>>, %arg4: memref<16x1xf32, #tpu.memory_space<vmem>>, %arg5: memref<1x256xf32, #tpu.memory_space<vmem>>, %arg6: memref<1x256xf32, #tpu.memory_space<vmem>>, %arg7: memref<1x1x256xf32, #tpu.memory_space<vmem>>, %arg8: memref<1x1x256xf32, #tpu.memory_space<vmem>>) attributes {dimension_semantics = [#tpu.dimension_semantics<parallel>, #tpu.dimension_semantics<parallel>], iteration_bounds = array<i64: 2, 1>, scalar_prefetch = 0 : i64, scratch_operands = 0 : i64, tpu.core_type = #tpu.core_type<tc>, window_params = [{transform_indices = @transform_0, window_bounds = array<i64: 1, 16, 16>}, {pipeline_mode = #tpu.pipeline_mode<synchronous>, transform_indices = @transform_1, window_bounds = array<i64: 16, 1>}, {pipeline_mode = #tpu.pipeline_mode<synchronous>, transform_indices = @transform_2, window_bounds = array<i64: 16, 1>}, {transform_indices = @transform_3, window_bounds = array<i64: 1, 256>}, {transform_indices = @transform_4, window_bounds = array<i64: 1, 256>}, {transform_indices = @transform_5, window_bounds = array<i64: 1, 1, 256>}, {transform_indices = @transform_6, window_bounds = array<i64: 1, 1, 256>}]} {
    %c0 = arith.constant 0 : index
    %c0_0 = arith.constant 0 : index
    %0 = vector.load %arg5[%c0, %c0_0] : memref<1x256xf32, #tpu.memory_space<vmem>>, vector<1x256xf32>
    %c0_1 = arith.constant 0 : index
    %c0_2 = arith.constant 0 : index
    %1 = vector.load %arg6[%c0_1, %c0_2] : memref<1x256xf32, #tpu.memory_space<vmem>>, vector<1x256xf32>
    %c0_3 = arith.constant 0 : index
    %c0_4 = arith.constant 0 : index
    %2 = vector.load %arg3[%c0_3, %c0_4] : memref<16x1xf32, #tpu.memory_space<vmem>>, vector<16x1xf32>
    %3 = vector.broadcast %2 : vector<16x1xf32> to vector<16x256xf32>
    %4 = vector.broadcast %0 : vector<1x256xf32> to vector<16x256xf32>
    %5 = arith.mulf %3, %4 : vector<16x256xf32>
    %cst = arith.constant 6.28318548 : f32
    %6 = vector.broadcast %cst : f32 to vector<16x256xf32>
    %7 = arith.mulf %6, %5 : vector<16x256xf32>
    %8 = math.cos %7 : vector<16x256xf32>
    %9 = math.sin %7 : vector<16x256xf32>
    %cst_5 = arith.constant 0.000000e+00 : f32
    %10 = vector.broadcast %cst_5 : f32 to vector<1x256xf32>
    %c0_i32 = arith.constant 0 : i32
    %c16_i32 = arith.constant 16 : i32
    %11 = arith.muli %c0_i32, %c16_i32 : i32
    %12 = tpu.assume_multiple %11, 16 : i32
    %c0_6 = arith.constant 0 : index
    %13 = arith.index_cast %12 : i32 to index
    %c0_7 = arith.constant 0 : index
    %14 = vector.load %arg2[%c0_6, %13, %c0_7] : memref<1x16x16xf32, #tpu.memory_space<vmem>>, vector<1x16x16xf32>
    %15 = vector.shape_cast %14 : vector<1x16x16xf32> to vector<16x16xf32>
    %16 = arith.index_cast %12 : i32 to index
    %c0_8 = arith.constant 0 : index
    %17 = vector.load %arg4[%16, %c0_8] : memref<16x1xf32, #tpu.memory_space<vmem>>, vector<16x1xf32>
    %18 = vector.broadcast %17 : vector<16x1xf32> to vector<16x256xf32>
    %19 = vector.broadcast %1 : vector<1x256xf32> to vector<16x256xf32>
    %20 = arith.mulf %18, %19 : vector<16x256xf32>
    %cst_9 = arith.constant 6.28318548 : f32
    %21 = vector.broadcast %cst_9 : f32 to vector<16x256xf32>
    %22 = arith.mulf %21, %20 : vector<16x256xf32>
    %23 = math.cos %22 : vector<16x256xf32>
    %24 = math.sin %22 : vector<16x256xf32>
    %cst_10 = arith.constant dense<0.000000e+00> : vector<16x256xf32>
    %25 = tpu.matmul %15, %8, %cst_10 {dimension_numbers = #tpu.dot_dimension_numbers<[1], [0], [0], [1], [0, 0, 1, 1], [], []>} : vector<16x16xf32>, vector<16x256xf32>, vector<16x256xf32> -> vector<16x256xf32>
    %cst_11 = arith.constant dense<0.000000e+00> : vector<16x256xf32>
    %26 = tpu.matmul %15, %9, %cst_11 {dimension_numbers = #tpu.dot_dimension_numbers<[1], [0], [0], [1], [0, 0, 1, 1], [], []>} : vector<16x16xf32>, vector<16x256xf32>, vector<16x256xf32> -> vector<16x256xf32>
    %27 = arith.mulf %25, %23 : vector<16x256xf32>
    %28 = arith.mulf %26, %24 : vector<16x256xf32>
    %29 = arith.subf %27, %28 : vector<16x256xf32>
    %cst_12 = arith.constant dense<0.000000e+00> : vector<256xf32>
    %30 = vector.multi_reduction <add>, %29, %cst_12 [0] : vector<16x256xf32> to vector<256xf32>
    %31 = vector.shape_cast %30 : vector<256xf32> to vector<1x256xf32>
    %32 = arith.addf %10, %31 : vector<1x256xf32>
    %33 = arith.mulf %26, %23 : vector<16x256xf32>
    %34 = arith.mulf %25, %24 : vector<16x256xf32>
    %35 = arith.addf %33, %34 : vector<16x256xf32>
    %cst_13 = arith.constant dense<0.000000e+00> : vector<256xf32>
    %36 = vector.multi_reduction <add>, %35, %cst_13 [0] : vector<16x256xf32> to vector<256xf32>
    %37 = vector.shape_cast %36 : vector<256xf32> to vector<1x256xf32>
    %38 = arith.subf %10, %37 : vector<1x256xf32>
    %c1_i32 = arith.constant 1 : i32
    %c0_14 = arith.constant 0 : index
    %c0_15 = arith.constant 0 : index
    %c0_16 = arith.constant 0 : index
    %39 = vector.load %arg7[%c0_14, %c0_15, %c0_16] : memref<1x1x256xf32, #tpu.memory_space<vmem>>, vector<1x1x256xf32>
    %40 = vector.shape_cast %39 : vector<1x1x256xf32> to vector<1x256xf32>
    %41 = vector.shape_cast %32 : vector<1x256xf32> to vector<1x1x256xf32>
    tpu.vector_store %arg7[%c0_14, %c0_15, %c0_16], %41 {strides = array<i32>} : memref<1x1x256xf32, #tpu.memory_space<vmem>>, vector<1x1x256xf32>,
    %c0_17 = arith.constant 0 : index
    %c0_18 = arith.constant 0 : index
    %c0_19 = arith.constant 0 : index
    %42 = vector.load %arg8[%c0_17, %c0_18, %c0_19] : memref<1x1x256xf32, #tpu.memory_space<vmem>>, vector<1x1x256xf32>
    %43 = vector.shape_cast %42 : vector<1x1x256xf32> to vector<1x256xf32>
    %44 = vector.shape_cast %38 : vector<1x256xf32> to vector<1x1x256xf32>
    tpu.vector_store %arg8[%c0_17, %c0_18, %c0_19], %44 {strides = array<i32>} : memref<1x1x256xf32, #tpu.memory_space<vmem>>, vector<1x1x256xf32>,
    return
  }
  func.func @transform_0(%arg0: i32, %arg1: i32) -> (i32, i32, i32) {
    %c0_i32 = arith.constant 0 : i32
    %c0_i32_0 = arith.constant 0 : i32
    %c0_i32_1 = arith.constant 0 : i32
    return %arg0, %c0_i32, %c0_i32_0 : i32, i32, i32
  }
  func.func @transform_1(%arg0: i32, %arg1: i32) -> (i32, i32) {
    %c0_i32 = arith.constant 0 : i32
    %c0_i32_0 = arith.constant 0 : i32
    %c0_i32_1 = arith.constant 0 : i32
    return %c0_i32, %c0_i32_0 : i32, i32
  }
  func.func @transform_2(%arg0: i32, %arg1: i32) -> (i32, i32) {
    %c0_i32 = arith.constant 0 : i32
    %c0_i32_0 = arith.constant 0 : i32
    %c0_i32_1 = arith.constant 0 : i32
    return %c0_i32, %c0_i32_0 : i32, i32
  }
  func.func @transform_3(%arg0: i32, %arg1: i32) -> (i32, i32) {
    %c0_i32 = arith.constant 0 : i32
    %c0_i32_0 = arith.constant 0 : i32
    return %c0_i32, %arg1 : i32, i32
  }
  func.func @transform_4(%arg0: i32, %arg1: i32) -> (i32, i32) {
    %c0_i32 = arith.constant 0 : i32
    %c0_i32_0 = arith.constant 0 : i32
    return %c0_i32, %arg1 : i32, i32
  }
  func.func @transform_5(%arg0: i32, %arg1: i32) -> (i32, i32, i32) {
    %c0_i32 = arith.constant 0 : i32
    %c0_i32_0 = arith.constant 0 : i32
    return %arg0, %c0_i32, %arg1 : i32, i32, i32
  }
  func.func @transform_6(%arg0: i32, %arg1: i32) -> (i32, i32, i32) {
    %c0_i32 = arith.constant 0 : i32
    %c0_i32_0 = arith.constant 0 : i32
    return %arg0, %c0_i32, %arg1 : i32, i32, i32
  }
}

</mosaic_0001>

<bundles_post_ra>
// kernel: custom-call
= control target key start
LH: loop header
LB: loop body
LE: loop exit
PB: predicated region body
PF: predicated region fallthrough
CT: control target
= control target key end

     0   :  { %s92_s0 = inlined_call_operand.vmem [shape: f32[2,256], index: 0, kind: input, shape index: {}]   ;;  %s93_s1 = inlined_call_operand.vmem [shape: f32[2,256], index: 1, kind: input, shape index: {}]   ;;  %s94_s2 = inlined_call_operand.hbm [shape: c64[2,256], index: 2, kind: output, shape index: {}]  }
   0x1   :  { %s3_s11 = scalar_lea.hbm %s94_s2, 64 }
   0x2   :  { %4 = vsyncpa [#allocation0], 0  ;;  %s5_s14 = sshll.u32 %s92_s0, 4  ;;  %s6_s14 = int_to_ptr.vmem [resolvable:$true] %s5_s14 }
   0x3   :  { %s18_s15 = scalar_lea.vmem %s6_s14, 64  ;;  %p23_p1 = scmp.lt.s32.totalorder %s6_s14, %s6_s14 }
   0x4   :  { %p19_p0 = scmp.ne.s32.totalorder %s6_s14, %s18_s15  ;;  %p24_p2 = scmp.lt.s32.totalorder %s18_s15, %s18_s15 }
   0x6   :  { %p25_p3 = por %p24_p2, %p23_p1 }
   0x8   :  { %p26_p4 = pnand %p25_p3, %p19_p0 }
   0xa   :  { %29 = shalt.err (!%p26_p4)  }
   0xb   :  { %8 = dma.vmem_to_hbm [thread:$0]  %s6_s14, 64, %s94_s2, [#allocation0] }
   0xc   :  { %61 = dma.done.wait [#allocation0], 64  }
   0xd   :  { %62 = vsyncadd [#allocation0], 4294967232 }
   0xe   :  { %10 = vsyncpa [#allocation0], 1 }
   0xf   :  { %11 = vsyncpa [#allocation1], 0  ;;  %s12_s0 = sshll.u32 %s93_s1, 4  ;;  %s13_s0 = int_to_ptr.vmem [resolvable:$true] %s12_s0 }
  0x10   :  { %s38_s20 = scalar_lea.vmem %s13_s0, 64  ;;  %p43_p6 = scmp.lt.s32.totalorder %s13_s0, %s13_s0 }
  0x11   :  { %p39_p5 = scmp.ne.s32.totalorder %s13_s0, %s38_s20  ;;  %p44_p7 = scmp.lt.s32.totalorder %s38_s20, %s38_s20 }
  0x13   :  { %p45_p8 = por %p44_p7, %p43_p6 }
  0x15   :  { %p46_p9 = pnand %p45_p8, %p39_p5 }
  0x17   :  { %49 = shalt.err (!%p46_p9)  }
  0x18   :  { %15 = dma.vmem_to_hbm [thread:$0]  %s13_s0, 64, %s3_s11, [#allocation1] }
  0x19   :  { %63 = dma.done.wait [#allocation1], 64  }
  0x1a   :  { %64 = vsyncadd [#allocation1], 4294967232 }
  0x1b   :  { %17 = vsyncpa [#allocation1], 1 }

// kernel: _lambda_.1
= control target key start
LH: loop header
LB: loop body
LE: loop exit
PB: predicated region body
PF: predicated region fallthrough
CT: control target
= control target key end

     0   :  { %s2706_s21 = smov 0   ;;  %s2708_s22 = smov 0   ;;  %s3652_s0 = inlined_call_operand.vmem [shape: f32[2,16,16], index: 0, kind: input, shape index: {}]   ;;  %s3653_s1 = inlined_call_operand.vmem [shape: f32[16,1], index: 1, kind: input, shape index: {}, may-alias: {1,2}]   ;;  %s3654_s2 = inlined_call_operand.vmem [shape: f32[16,1], index: 2, kind: input, shape index: {}, may-alias: {1,2}]   ;;  %s3655_s3 = inlined_call_operand.vmem [shape: f32[1,256], index: 3, kind: input, shape index: {}]   ;;  %s3656_s4 = inlined_call_operand.vmem [shape: f32[1,256], index: 4, kind: input, shape index: {}]   ;;  %s3657_s5 = inlined_call_operand.vmem [shape: f32[2,1,256], index: 5, kind: output, shape index: {0}]   ;;  %s3658_s6 = inlined_call_operand.vmem [shape: f32[2,1,256], index: 6, kind: output, shape index: {1}]  }
   0x1   :  { %s2710_s23 = smov 0  }
   0x2 LB: > { %s29_s24 = sadd.s32 1, %s2656_s22  ;;  %p2463_p0 = scmp.ge.s32.totalorder %s2660_s23, 1  ;;  %s2660_s23 = sphi %s2710_s23, %s17_s23   ;;  %s2656_s22 = sphi %s2708_s22, %s3682_s22   ;;  %s2652_s21 = sphi %s2706_s21, %s3681_s21  }
   0x3   : > { %p31_p1 = scmp.ge.s32.totalorder %s29_s24, 2  ;;  %p251_p2 = scmp.lt.s32.totalorder %s2660_s23, 3 }
   0x5   : > { %s3684_s24 = smov (%p31_p1, %s29_s24), 0  ;;  %p252_p3 = pnand %p2463_p0, %p251_p2 }
   0x6   : > { %p300_p4 = scmp.lt.s32.totalorder (!%p252_p3), %s2652_s21, 1 }
   0x7   : > { %255 = sbr.rel (%p252_p3) target bundleno = 506 (0x1fa), region = 40 }
   0xc   : > { %v336_v0 = vld [vmem:[%s3653_s1 + $0x8] sm:$0xff]  ;;  %v1196_v1 = vld [vmem:[%s3654_s2] sm:$0xff]  ;;  %v2662_v2 = vmov 0   ;;  %v3659_v5 = vlaneseq  ;;  %v2663_v47 = vmov 2475754826   ;;  %s3686_s21 = smov (!%p300_p4, %s2652_s21), 1 }
   0xd   : > { %2604 = vset.pattern.permute.xlu0 %v2662_v2  ;;  %2605 = vset.pattern.permute.xlu1 %v2662_v2  ;;  %v335_v3 = vld [vmem:[%s3653_s1] sm:$0xff]  ;;  %v1197_v4 = vld [vmem:[%s3654_s2 + $0x8] sm:$0xff]  ;;  %v2664_v49 = vmov 2102212464   ;;  %v2665_v52 = vmov 2131351028  }
   0xe   : > { %344 = vperm.xlu0 %2604, %v336_v0   ;;  %1200 = vperm.xlu1 %2605, %v1196_v1   ;;  %v2739_v6 = vshrl.u32 %v3659_v5, 7  ;;  %v333_v9 = vld [vmem:[%s3655_s3] sm:$0x3]  ;;  %v2666_v54 = vmov 920167782   ;;  %s2538_s11 = sshll.u32 %s3686_s21, 4 }
   0xf   : > { %v2667_v58 = vmov 683565275   ;;  %s304_s14 = scalar_lea.vmem %s3652_s0, %s2538_s11  ;;  %s2466_s17 = sshll.u32 %s3686_s21, 1 }
  0x10   : > { %v350_v7 = vsub.s32 0, %v2739_v6  ;;  %v354_v8 = vsub.s32 1, %v2739_v6  ;;  %s322_s20 = scalar_lea.vmem %s3657_s5, %s2466_s17  ;;  %s331_s27 = scalar_lea.vmem %s3658_s6, %s2466_s17 }
  0x12   : > { %339 = vperm.xlu0 %2604, %v335_v3   ;;  %1205 = vperm.xlu1 %2605, %v1197_v4   ;;  %v351_v10 = vrot.slane %v333_v9, %v350_v7  ;;  %v355_v11 = vrot.slane %v333_v9, %v354_v8 }
  0x89   : > { %v345_v12 = vpop.permute.xlu0 %344 }
  0x8a   : > { %v360_v13 = vmul.f32 %v351_v10, %v345_v12  ;;  %v361_v14 = vmul.f32 %v355_v11, %v345_v12 }
  0x8c   : > { %v2750_v15 = vmul.f32 6.2831855, %v360_v13  ;;  %v2752_v16 = vmul.f32 6.2831855, %v361_v14  ;;  %v2668_v13 = vmov 1326507024  }
  0x8d   : > { %v340_v17 = vpop.permute.xlu0 %339 }
  0x8e   : > { %v575_v18 = vand.u32 2139095040, %v2750_v15  ;;  %v678_v19 = vand.u32 2139095040, %v2752_v16  ;;  %v358_v20 = vmul.f32 %v351_v10, %v340_v17  ;;  %v359_v21 = vmul.f32 %v355_v11, %v340_v17 }
  0x8f   : > { %v675_v29 = vand.u32 2147483647, %v2752_v16  ;;  %v572_v40 = vand.u32 2147483647, %v2750_v15 }
  0x90   : > { %v576_v22 = vshrl.u32 %v575_v18, 23  ;;  %v679_v23 = vshrl.u32 %v678_v19, 23  ;;  %v2756_v24 = vmul.f32 6.2831855, %v358_v20  ;;  %v2758_v25 = vmul.f32 6.2831855, %v359_v21 }
  0x91   : > { %v682_v35 = vand.u32 8388607, %v675_v29  ;;  %v579_v45 = vand.u32 8388607, %v572_v40 }
  0x92   : > { %v2476_v26 = vadd.s32 4294967169, %v576_v22  ;;  %v2480_v27 = vadd.s32 4294967169, %v679_v23  ;;  %v369_v28 = vand.u32 2139095040, %v2756_v24  ;;  %v472_v30 = vand.u32 2139095040, %v2758_v25 }
  0x93   : > { %v683_v43 = vor.u32 8388608, %v682_v35  ;;  %v469_v56 = vand.u32 2147483647, %v2758_v25  ;;  %v580_v61 = vor.u32 8388608, %v579_v45 }
  0x94   : > { %v685_v31 = vadd.s32 1, %v2480_v27  ;;  %v370_v32 = vshrl.u32 %v369_v28, 23  ;;  %v473_v33 = vshrl.u32 %v472_v30, 23  ;;  %v582_v34 = vadd.s32 1, %v2476_v26 }
  0x95   : > { %v2770_v51 = vshll.u32 %v683_v43, 8  ;;  %v2793_v20 = vshll.u32 %v580_v61, 8 }
  0x96   : > { %vm686_vm0 = vcmp.gt.s32.totalorder %v685_v31, 0  ;;  %v2468_v37 = vadd.s32 4294967169, %v370_v32  ;;  %v2472_v38 = vadd.s32 4294967169, %v473_v33  ;;  %vm583_vm1 = vcmp.gt.s32.totalorder %v582_v34, 0 }
  0x97   : > { %v687_v36 = vsel %vm686_vm0, %v685_v31, 0  ;;  %v584_v46 = vsel %vm583_vm1, %v582_v34, 0 }
  0x98   : > { %v689_v39 = vand.u32 31, %v687_v36  ;;  %v479_v42 = vadd.s32 1, %v2472_v38  ;;  %v376_v44 = vadd.s32 1, %v2468_v37  ;;  %v586_v57 = vand.u32 31, %v584_v46 }
  0x99   : > { %v688_v62 = vshrl.u32 %v687_v36, 5  ;;  %v2782_v2 = vshrl.u32 %v584_v46, 5 }
  0x9a   : > { %v690_v41 = vsub.s32 32, %v689_v39  ;;  %vm480_vm2 = vcmp.gt.s32.totalorder %v479_v42, 0  ;;  %vm377_vm3 = vcmp.gt.s32.totalorder %v376_v44, 0  ;;  %v692_v59 = vshll.u32 %v2667_v58, %v689_v39 }
  0x9b   : > { %v698_v60 = vshll.u32 %v2665_v52, %v689_v39  ;;  %v2778_v63 = vsel %vm480_vm2, %v479_v42, 0  ;;  %v695_v0 = vshll.u32 %v2663_v47, %v689_v39  ;;  %v701_v1 = vshll.u32 %v2664_v49, %v689_v39 }
  0x9c   : > { %v693_v48 = vshrl.u32 %v2663_v47, %v690_v41  ;;  %v699_v50 = vshrl.u32 %v2664_v49, %v690_v41  ;;  %v696_v53 = vshrl.u32 %v2665_v52, %v690_v41  ;;  %v702_v55 = vshrl.u32 %v2666_v54, %v690_v41 }
  0x9d   : > { %v2785_v3 = vsel %vm377_vm3, %v376_v44, 0  ;;  %v704_v12 = vshll.u32 %v2666_v54, %v689_v39  ;;  %v705_v14 = vshrl.u32 %v2668_v13, %v690_v41  ;;  %v587_v17 = vsub.s32 32, %v586_v57 }
  0x9e   : > { %v694_v4 = vor.u32 %v693_v48, %v692_v59  ;;  %v700_v9 = vor.u32 %v699_v50, %v698_v60  ;;  %v697_v10 = vor.u32 %v696_v53, %v695_v0  ;;  %v703_v11 = vor.u32 %v702_v55, %v701_v1 }
  0x9f   : > { %v2790_v18 = vand.u32 31, %v2778_v63  ;;  %v691_v19 = vshrl.u32 %v2667_v58, %v690_v41  ;;  %v2796_v21 = vand.u32 31, %v2785_v3  ;;  %v706_v22 = vor.u32 %v705_v14, %v704_v12 }
  0xa0   : > { %vm707_vm4 = vcmp.lt.s32.totalorder %v688_v62, 1  ;;  %vm710_vm5 = vcmp.lt.s32.totalorder %v688_v62, 4  ;;  %vm708_vm6 = vcmp.lt.s32.totalorder %v688_v62, 2  ;;  %vm709_vm7 = vcmp.lt.s32.totalorder %v688_v62, 3 }
  0xa1   : > { %v711_v23 = vsel %vm707_vm4, %v691_v19, %v694_v4  ;;  %v712_v26 = vsel %vm710_vm5, %v700_v9, 2102212464  ;;  %v715_v28 = vsel %vm707_vm4, %v694_v4, %v697_v10  ;;  %v716_v30 = vsel %vm710_vm5, %v703_v11, 920167782 }
  0xa2   : > { %v713_v27 = vsel %vm709_vm7, %v697_v10, %v712_v26  ;;  %v719_v31 = vsel %vm707_vm4, %v697_v10, %v700_v9  ;;  %v2799_v32 = vsub.s32 32, %v2790_v18  ;;  %v717_v34 = vsel %vm709_vm7, %v700_v9, %v716_v30 }
  0xa3   : > { %v714_v33 = vsel %vm708_vm6, %v711_v23, %v713_v27  ;;  %v720_v35 = vsel %vm710_vm5, %v706_v22, 1326507024  ;;  %v718_v36 = vsel %vm708_vm6, %v715_v28, %v717_v34  ;;  %v588_v38 = vshrl.u32 %v2667_v58, %v587_v17 }
  0xa4   : > { %v721_v37 = vsel %vm709_vm7, %v703_v11, %v720_v35  ;;  %v589_v39 = vshll.u32 %v2667_v58, %v586_v57  ;;  %v2807_v42 = vmul.u32.u64.low %v2770_v51, %v718_v36  ;;  %v2808_v43 = vmul.u32.u64.high %v2770_v51, %v718_v36, %v2807_v42 }
  0xa5   : > { %v722_v41 = vsel %vm708_vm6, %v719_v31, %v721_v37  ;;  %v590_v44 = vshrl.u32 %v2663_v47, %v587_v17  ;;  %v592_v48 = vshll.u32 %v2663_v47, %v586_v57  ;;  %v593_v50 = vshrl.u32 %v2665_v52, %v587_v17 }
  0xa6   : > { %v2813_v45 = vmul.u32.u64.low %v2770_v51, %v722_v41  ;;  %v2814_v46 = vmul.u32.u64.high %v2770_v51, %v722_v41, %v2813_v45  ;;  %v595_v55 = vshll.u32 %v2665_v52, %v586_v57  ;;  %v596_v59 = vshrl.u32 %v2664_v49, %v587_v17 }
  0xa7   : > { %v591_v53 = vor.u32 %v590_v44, %v589_v39  ;;  %v598_v60 = vshll.u32 %v2664_v49, %v586_v57  ;;  %v594_v61 = vor.u32 %v593_v50, %v592_v48  ;;  %v599_v62 = vshrl.u32 %v2666_v54, %v587_v17 }
  0xa8   : > { %v601_v0 = vshll.u32 %v2666_v54, %v586_v57  ;;  %v602_v1 = vshrl.u32 %v2668_v13, %v587_v17  ;;  %v730_v4 = vmul.u32 %v2770_v51, %v714_v33  ;;  %v733_v9 = vadd.s32 1, %v2808_v43 }
  0xa9   : > { %v597_v10 = vor.u32 %v596_v59, %v595_v55  ;;  %vm604_vm8 = vcmp.lt.s32.totalorder %v2782_v2, 1  ;;  %vm732_vm9 = vc.u32 %v2814_v46, %v2807_v42  ;;  %v600_v11 = vor.u32 %v599_v62, %v598_v60 }
  0xaa   : > { %v603_v12 = vor.u32 %v602_v1, %v601_v0  ;;  %vm605_vm10 = vcmp.lt.s32.totalorder %v2782_v2, 2  ;;  %v734_v14 = vsel %vm732_vm9, %v733_v9, %v2808_v43  ;;  %vm606_vm11 = vcmp.lt.s32.totalorder %v2782_v2, 3 }
  0xab   : > { %vm607_vm12 = vcmp.lt.s32.totalorder %v2782_v2, 4  ;;  %v608_v57 = vsel %vm604_vm8, %v588_v38, %v591_v53  ;;  %v735_v51 = vadd.s32 %v734_v14, %v730_v4  ;;  %v612_v19 = vsel %vm604_vm8, %v591_v53, %v594_v61 }
  0xac   : > { %v609_v17 = vsel %vm607_vm12, %v597_v10, 2102212464  ;;  %v613_v22 = vsel %vm607_vm12, %v600_v11, 920167782  ;;  %v616_v27 = vsel %vm604_vm8, %v594_v61, %v597_v10  ;;  %v617_v28 = vsel %vm607_vm12, %v603_v12, 1326507024 }
  0xad   : > { %v610_v23 = vsel %vm606_vm11, %v594_v61, %v609_v17  ;;  %v614_v26 = vsel %vm606_vm11, %v597_v10, %v613_v22  ;;  %v736_v30 = vadd.s32 536870912, %v735_v51  ;;  %v618_v33 = vsel %vm606_vm11, %v600_v11, %v617_v28 }
  0xae   : > { %v615_v31 = vsel %vm605_vm10, %v612_v19, %v614_v26  ;;  %v619_v34 = vsel %vm605_vm10, %v616_v27, %v618_v33  ;;  %v476_v37 = vand.u32 8388607, %v469_v56  ;;  %v611_v39 = vsel %vm605_vm10, %v608_v57, %v610_v23 }
  0xaf   : > { %v2838_v35 = vmul.u32.u64.low %v2793_v20, %v615_v31  ;;  %v2839_v36 = vmul.u32.u64.high %v2793_v20, %v615_v31, %v2838_v35  ;;  %v2844_v38 = vshrl.u32 %v736_v30, 30  ;;  %v2853_v44 = vsub.s32 32, %v2796_v21 }
  0xb0   : > { %v2849_v41 = vmul.u32.u64.low %v2793_v20, %v619_v34  ;;  %v2850_v43 = vmul.u32.u64.high %v2793_v20, %v619_v34, %v2849_v41  ;;  %v2856_v45 = vshrl.u32 %v2778_v63, 5  ;;  %v496_v48 = vshrl.u32 %v2666_v54, %v2799_v32 }
  0xb1   : > { %v499_v50 = vshrl.u32 %v2668_v13, %v2799_v32  ;;  %v495_v2 = vshll.u32 %v2664_v49, %v2790_v18  ;;  %v498_v53 = vshll.u32 %v2666_v54, %v2790_v18  ;;  %v738_v55 = vshll.u32 %v2844_v38, 30 }
  0xb2   : > { %v490_v59 = vshrl.u32 %v2665_v52, %v2799_v32  ;;  %v627_v63 = vmul.u32 %v2793_v20, %v611_v39  ;;  %v630_v60 = vadd.s32 1, %v2839_v36  ;;  %v487_v61 = vshrl.u32 %v2663_v47, %v2799_v32 }
  0xb3   : > { %v493_v62 = vshrl.u32 %v2664_v49, %v2799_v32  ;;  %v739_v0 = vsub.s32 %v735_v51, %v738_v55  ;;  %vm629_vm13 = vc.u32 %v2850_v43, %v2838_v35  ;;  %v489_v1 = vshll.u32 %v2663_v47, %v2790_v18 }
  0xb4   : > { %v492_v4 = vshll.u32 %v2665_v52, %v2790_v18  ;;  %v497_v9 = vor.u32 %v496_v48, %v495_v2  ;;  %v500_v20 = vor.u32 %v499_v50, %v498_v53  ;;  %v631_v10 = vsel %vm629_vm13, %v630_v60, %v2839_v36 }
  0xb5   : > { %v486_v11 = vshll.u32 %v2667_v58, %v2790_v18  ;;  %v741_v12 = vsub.s32 0, %v739_v0  ;;  %v632_v14 = vadd.s32 %v631_v10, %v627_v63  ;;  %v491_v57 = vor.u32 %v490_v59, %v489_v1 }
  0xb6   : > { %v494_v51 = vor.u32 %v493_v62, %v492_v4  ;;  %v2885_v17 = vshrl.u32 %v2785_v3, 5  ;;  %vm504_vm14 = vcmp.lt.s32.totalorder %v2856_v45, 4  ;;  %v393_v22 = vshrl.u32 %v2666_v54, %v2853_v44 }
  0xb7   : > { %v488_v19 = vor.u32 %v487_v61, %v486_v11  ;;  %v396_v23 = vshrl.u32 %v2668_v13, %v2853_v44  ;;  %v2481_v26 = vmin.u32 %v741_v12, %v739_v0  ;;  %v477_v27 = vor.u32 8388608, %v476_v37 }
  0xb8   : > { %v510_v18 = vsel %vm504_vm14, %v497_v9, 920167782  ;;  %v514_v28 = vsel %vm504_vm14, %v500_v20, 1326507024  ;;  %v633_v30 = vadd.s32 536870912, %v632_v14  ;;  %vm501_vm15 = vcmp.lt.s32.totalorder %v2856_v45, 1 }
  0xb9   : > { %v392_v3 = vshll.u32 %v2664_v49, %v2796_v21  ;;  %v395_v31 = vshll.u32 %v2666_v54, %v2796_v21  ;;  %v743_v33 = vclz %v2481_v26  ;;  %v513_v34 = vsel %vm501_vm15, %v491_v57, %v494_v51 }
  0xba   : > { %v2903_v36 = vshrl.u32 %v633_v30, 30  ;;  %vm502_vm0 = vcmp.lt.s32.totalorder %v2856_v45, 2  ;;  %vm503_vm1 = vcmp.lt.s32.totalorder %v2856_v45, 3  ;;  %v509_v37 = vsel %vm501_vm15, %v488_v19, %v491_v57 }
  0xbb   : > { %v2482_v39 = vadd.s32 4294967294, %v743_v33  ;;  %v511_v41 = vsel %vm503_vm1, %v494_v51, %v510_v18  ;;  %v515_v48 = vsel %vm503_vm1, %v497_v9, %v514_v28  ;;  %v517_v50 = vshll.u32 %v477_v27, 8 }
  0xbc   : > { %v2913_v2 = vor.u32 %v393_v22, %v392_v3  ;;  %v397_v53 = vor.u32 %v396_v23, %v395_v31  ;;  %v635_v55 = vshll.u32 %v2903_v36, 30  ;;  %v516_v59 = vsel %vm502_vm0, %v513_v34, %v515_v48 }
  0xbd   : > { %vm2483_vm2 = vcmp.lt.s32.totalorder %v2482_v39, 0  ;;  %v506_v63 = vsel %vm504_vm14, %v494_v51, 2102212464  ;;  %v2920_v60 = vmul.u32.u64.low %v517_v50, %v516_v59  ;;  %v2921_v61 = vmul.u32.u64.high %v517_v50, %v516_v59, %v2920_v60 }
  0xbe   : > { %v746_v62 = vsel %vm2483_vm2, 0, %v2482_v39  ;;  %v2923_v1 = vsub.s32 %v632_v14, %v635_v55  ;;  %v485_v4 = vshrl.u32 %v2667_v58, %v2799_v32  ;;  %v512_v9 = vsel %vm502_vm0, %v509_v37, %v511_v41 }
  0xbf   : > { %v731_v20 = vadd.s32 %v2807_v42, %v2814_v46  ;;  %v747_v10 = vsub.s32 32, %v746_v62  ;;  %v751_v11 = vsub.s32 4294967266, %v746_v62  ;;  %v761_v12 = vsub.s32 4, %v2844_v38 }
  0xc0   : > { %v748_v51 = vshll.u32 %v739_v0, %v746_v62  ;;  %v638_v22 = vsub.s32 0, %v2923_v1  ;;  %v505_v14 = vsel %vm501_vm15, %v485_v4, %v488_v19  ;;  %v507_v23 = vsel %vm503_vm1, %v491_v57, %v506_v63 }
  0xc1   : > { %v749_v32 = vshrl.u32 %v731_v20, %v747_v10  ;;  %v752_v26 = vadd.s32 127, %v751_v11  ;;  %v2937_v27 = vmul.u32.u64.low %v517_v50, %v512_v9  ;;  %v2938_v18 = vmul.u32.u64.high %v517_v50, %v512_v9, %v2937_v27 }
  0xc2   : > { %v2477_v42 = vmin.u32 %v638_v22, %v2923_v1  ;;  %vm2944_vm3 = vcmp.le.f32.partialorder %v675_v29, 0.7853982  ;;  %vm677_vm4 = vcmp.lt.s32.totalorder %v2752_v16, 0  ;;  %vm401_vm5 = vcmp.lt.s32.totalorder %v2885_v17, 4 }
  0xc3   : > { %v750_v0 = vor.u32 %v749_v32, %v748_v51  ;;  %v753_v19 = vshll.u32 %v752_v26, 23  ;;  %v762_v57 = vsel %vm677_vm4, %v761_v12, %v2844_v38  ;;  %v508_v30 = vsel %vm502_vm0, %v505_v14, %v507_v23 }
  0xc4   : > { %v640_v28 = vclz %v2477_v42  ;;  %v407_v29 = vsel %vm401_vm5, %v2913_v2, 920167782  ;;  %v411_v3 = vsel %vm401_vm5, %v397_v53, 1326507024  ;;  %vm526_vm6 = vc.u32 %v2921_v61, %v2937_v27 }
  0xc5   : > { %v754_v31 = vor.u32 4788187, %v753_v19  ;;  %v628_v33 = vadd.s32 %v2838_v35, %v2850_v43  ;;  %v527_v38 = vadd.s32 1, %v2938_v18  ;;  %v366_v45 = vand.u32 2147483647, %v2756_v24 }
  0xc6   : > { %v2478_v34 = vadd.s32 4294967294, %v640_v28  ;;  %v757_v39 = vcvt.s32.f32 %v750_v0  ;;  %v764_v41 = vsel %vm2944_vm3, 0, %v762_v57  ;;  %v524_v48 = vmul.u32 %v517_v50, %v508_v30 }
  0xc7   : > { %v755_v37 = vand.u32 2147483647, %v754_v31  ;;  %v528_v53 = vsel %vm526_vm6, %v527_v38, %v2938_v18  ;;  %v384_v55 = vshrl.u32 %v2663_v47, %v2853_v44  ;;  %v387_v35 = vshrl.u32 %v2665_v52, %v2853_v44 }
  0xc8   : > { %vm2479_vm7 = vcmp.lt.s32.totalorder %v2478_v34, 0  ;;  %v529_v63 = vadd.s32 %v528_v53, %v524_v48  ;;  %v390_v60 = vshrl.u32 %v2664_v49, %v2853_v44  ;;  %v373_v50 = vand.u32 8388607, %v366_v45 }
  0xc9   : > { %v758_v43 = vmul.f32 %v757_v39, %v755_v37  ;;  %v643_v59 = vsel %vm2479_vm7, 0, %v2478_v34  ;;  %v383_v9 = vshll.u32 %v2667_v58, %v2796_v21  ;;  %v386_v11 = vshll.u32 %v2663_v47, %v2796_v21 }
  0xca   : > { %v644_v62 = vsub.s32 32, %v643_v59  ;;  %v648_v4 = vsub.s32 4294967266, %v643_v59  ;;  %v530_v10 = vadd.s32 536870912, %v529_v63  ;;  %v389_v12 = vshll.u32 %v2665_v52, %v2796_v21 }
  0xcb   : > { %v759_v20 = vxor.u32 2147483648, %v758_v43  ;;  %v645_v51 = vshll.u32 %v2923_v1, %v643_v59  ;;  %v385_v23 = vor.u32 %v384_v55, %v383_v9  ;;  %v388_v18 = vor.u32 %v387_v35, %v386_v11 }
  0xcc   : > { %v646_v22 = vshrl.u32 %v628_v33, %v644_v62  ;;  %v649_v14 = vadd.s32 127, %v648_v4  ;;  %v2986_v26 = vshrl.u32 %v530_v10, 30  ;;  %v391_v42 = vor.u32 %v390_v60, %v389_v12 }
  0xcd   : > { %v760_v32 = vsel %vm677_vm4, %v759_v20, %v758_v43  ;;  %v2991_v19 = vand.u32 3, %v764_v41  ;;  %v1183_v1 = vadd.s32 3, %v764_v41  ;;  %v374_v30 = vor.u32 8388608, %v373_v50 }
  0xce   : > { %v763_v0 = vsel %vm2944_vm3, %v2752_v16, %v760_v32  ;;  %v647_v57 = vor.u32 %v646_v22, %v645_v51  ;;  %v650_v21 = vshll.u32 %v649_v14, 23  ;;  %v532_v28 = vshll.u32 %v2986_v26, 30 }
  0xcf   : > { %2606 = vcosq.f32 %v763_v0  ;;  %vm398_vm8 = vcmp.lt.s32.totalorder %v2885_v17, 1  ;;  %vm400_vm9 = vcmp.lt.s32.totalorder %v2885_v17, 3  ;;  %vm399_vm10 = vcmp.lt.s32.totalorder %v2885_v17, 2 }
  0xd0   : > { %2608 = vsinq.f32 %v763_v0  ;;  %v651_v31 = vor.u32 4788187, %v650_v21  ;;  %v2996_v33 = vsub.s32 %v529_v63, %v532_v28  ;;  %v406_v46 = vsel %vm398_vm8, %v385_v23, %v388_v18 }
  0xd1   : > { %v408_v34 = vsel %vm400_vm9, %v391_v42, %v407_v29  ;;  %v410_v38 = vsel %vm398_vm8, %v388_v18, %v391_v42  ;;  %v654_v39 = vcvt.s32.f32 %v647_v57  ;;  %v412_v41 = vsel %vm400_vm9, %v2913_v2, %v411_v3 }
  0xd2   : > { %v652_v37 = vand.u32 2147483647, %v651_v31  ;;  %v535_v48 = vsub.s32 0, %v2996_v33  ;;  %v382_v53 = vshrl.u32 %v2667_v58, %v2853_v44  ;;  %v403_v55 = vsel %vm401_vm5, %v391_v42, 2102212464 }
  0xd3   : > { %v413_v29 = vsel %vm399_vm10, %v410_v38, %v412_v41  ;;  %v409_v43 = vsel %vm399_vm10, %v406_v46, %v408_v34  ;;  %v414_v59 = vshll.u32 %v374_v30, 8  ;;  %v1184_v63 = vand.u32 3, %v1183_v1 }
  0xd4   : > { %v655_v35 = vmul.f32 %v654_v39, %v652_v37  ;;  %vm574_vm11 = vcmp.lt.s32.totalorder %v2750_v15, 0  ;;  %v658_v2 = vsub.s32 4, %v2903_v36  ;;  %v2473_v3 = vmin.u32 %v535_v48, %v2996_v33 }
  0xd5   : > { %v2669_v60 = vmov 0.0   ;;  %v402_v62 = vsel %vm398_vm8, %v382_v53, %v385_v23  ;;  %v3024_v4 = vmul.u32.u64.low %v414_v59, %v413_v29  ;;  %v3025_v50 = vmul.u32.u64.high %v414_v59, %v413_v29, %v3024_v4 }
  0xd6   : > { %2126 = vmatprep.mubr.f32.mxu0 %v2669_v60  ;;  %2203 = vmatprep.mubr.f32.mxu1 %v2669_v60  ;;  %v656_v44 = vxor.u32 2147483648, %v655_v35  ;;  %v537_v9 = vclz %v2473_v3  ;;  %v404_v20 = vsel %vm400_vm9, %v388_v18, %v403_v55  ;;  %vm769_vm12 = vcmp.lt.s32.totalorder %v2991_v19, 2 }
  0xd7   : > { %v3029_v10 = vmul.u32.u64.low %v414_v59, %v409_v43  ;;  %v3030_v11 = vmul.u32.u64.high %v414_v59, %v409_v43, %v3029_v10  ;;  %vm3036_vm13 = vcmp.le.f32.partialorder %v572_v40, 0.7853982  ;;  %vm767_vm14 = vweird.f32 %v2752_v16 }
  0xd8   : > { %v657_v51 = vsel %vm574_vm11, %v656_v44, %v655_v35  ;;  %vm770_vm15 = vcmp.eq.s32.totalorder %v2991_v19, 0  ;;  %v659_v22 = vsel %vm574_vm11, %v658_v2, %v2903_v36  ;;  %v2474_v23 = vadd.s32 4294967294, %v537_v9 }
  0xd9   : > { %v660_v14 = vsel %vm3036_vm13, %v2750_v15, %v657_v51  ;;  %vm773_vm0 = vcmp.eq.s32.totalorder %v2991_v19, 2  ;;  %vm1185_vm1 = vcmp.lt.s32.totalorder %v1184_v63, 2  ;;  %v405_v40 = vsel %vm399_vm10, %v402_v62, %v404_v20 }
  0xda   : > { %2610 = vcosq.f32 %v660_v14  ;;  %vm2475_vm2 = vcmp.lt.s32.totalorder %v2474_v23, 0  ;;  %vm423_vm3 = vc.u32 %v3025_v50, %v3029_v10  ;;  %v424_v32 = vadd.s32 1, %v3030_v11 }
  0xdb   : > { %2612 = vsinq.f32 %v660_v14  ;;  %vm1186_vm4 = vcmp.eq.s32.totalorder %v1184_v63, 0  ;;  %vm1189_vm5 = vcmp.eq.s32.totalorder %v1184_v63, 2  ;;  %v661_v18 = vsel %vm3036_vm13, 0, %v659_v22 }
  0xdc   : > { %v2607_v36 = vpop.eup %2606  ;;  %v540_v42 = vsel %vm2475_vm2, 0, %v2474_v23  ;;  %v525_v17 = vadd.s32 %v2937_v27, %v2921_v61  ;;  %v421_v31 = vmul.u32 %v414_v59, %v405_v40  ;;  %v425_v46 = vsel %vm423_vm3, %v424_v32, %v3030_v11 }
  0xdd   : > { %v2609_v0 = vpop.eup %2608  ;;  %v774_v57 = vxor.u32 2147483648, %v2607_v36  ;;  %v541_v21 = vsub.s32 32, %v540_v42  ;;  %v545_v1 = vsub.s32 4294967266, %v540_v42  ;;  %v542_v30 = vshll.u32 %v2996_v33, %v540_v42 }
  0xde   : > { %v771_v28 = vxor.u32 2147483648, %v2609_v0  ;;  %v1079_v61 = vadd.s32 3, %v661_v18  ;;  %v426_v27 = vadd.s32 %v425_v46, %v421_v31  ;;  %v665_v2 = vand.u32 3, %v661_v18 }
  0xdf   : > { %v775_v34 = vsel %vm773_vm0, %v774_v57, %v2609_v0  ;;  %v1191_v38 = vsel %vm1189_vm5, %v774_v57, %v2609_v0  ;;  %v543_v37 = vshrl.u32 %v525_v17, %v541_v21  ;;  %v546_v39 = vadd.s32 127, %v545_v1 }
  0xe0   : > { %v772_v41 = vsel %vm770_vm15, %v2607_v36, %v771_v28  ;;  %v1188_v48 = vsel %vm1186_vm4, %v2607_v36, %v771_v28  ;;  %v427_v59 = vadd.s32 536870912, %v426_v27  ;;  %v1080_v62 = vand.u32 3, %v1079_v61 }
  0xe1   : > { %v776_v53 = vsel %vm769_vm12, %v772_v41, %v775_v34  ;;  %v1192_v33 = vsel %vm1185_vm1, %v1188_v48, %v1191_v38  ;;  %v544_v55 = vor.u32 %v543_v37, %v542_v30  ;;  %v547_v29 = vshll.u32 %v546_v39, 23 }
  0xe2   : > { %v777_v35 = vsel %vm767_vm14, nan, %v776_v53  ;;  %v1193_v43 = vsel %vm767_vm14, nan, %v1192_v33  ;;  %v3074_v44 = vshrl.u32 %v427_v59, 30  ;;  %vm664_vm6 = vweird.f32 %v2750_v15 }
  0xe3   : > { %2090 = vmatprep.subr.mxu0 %v777_v35  ;;  %2167 = vmatprep.subr.mxu1 %v1193_v43  ;;  %v548_v3 = vor.u32 4788187, %v547_v29  ;;  %v551_v4 = vcvt.s32.f32 %v544_v55  ;;  %vm471_vm7 = vcmp.lt.s32.totalorder %v2758_v25, 0  ;;  %vm666_vm8 = vcmp.lt.s32.totalorder %v665_v2, 2 }
  0xe4   : > { %v429_v63 = vshll.u32 %v3074_v44, 30  ;;  %vm3081_vm9 = vcmp.le.f32.partialorder %v469_v56, 0.7853982  ;;  %vm667_vm10 = vcmp.eq.s32.totalorder %v665_v2, 0  ;;  %vm670_vm11 = vcmp.eq.s32.totalorder %v665_v2, 2 }
  0xe5   : > { %v549_v19 = vand.u32 2147483647, %v548_v3  ;;  %vm1082_vm12 = vcmp.eq.s32.totalorder %v1080_v62, 0  ;;  %vm1085_vm13 = vcmp.eq.s32.totalorder %v1080_v62, 2  ;;  %v555_v32 = vsub.s32 4, %v2986_v26 }
  0xe6   : > { %v430_v51 = vsub.s32 %v426_v27, %v429_v63  ;;  %vm1081_vm14 = vcmp.lt.s32.totalorder %v1080_v62, 2  ;;  %v422_v15 = vadd.s32 %v3029_v10, %v3025_v50 }
  0xe7   : > { %v2611_v9 = vpop.eup %2610  ;;  %v552_v20 = vmul.f32 %v551_v4, %v549_v19  ;;  %v556_v30 = vsel %vm471_vm7, %v555_v32, %v2986_v26 }
  0xe8   : > { %v2613_v11 = vpop.eup %2612  ;;  %v671_v12 = vxor.u32 2147483648, %v2611_v9  ;;  %v432_v36 = vsub.s32 0, %v430_v51  ;;  %v558_v34 = vsel %vm3081_vm9, 0, %v556_v30 }
  0xe9   : > { %v668_v22 = vxor.u32 2147483648, %v2613_v11  ;;  %v553_v14 = vxor.u32 2147483648, %v552_v20  ;;  %v975_v37 = vadd.s32 3, %v558_v34  ;;  %v562_v53 = vand.u32 3, %v558_v34 }
  0xea   : > { %v672_v23 = vsel %vm670_vm11, %v671_v12, %v2613_v11  ;;  %v1087_v40 = vsel %vm1085_vm13, %v671_v12, %v2613_v11  ;;  %v2469_v21 = vmin.u32 %v432_v36, %v430_v51 }
  0xeb   : > { %v669_v18 = vsel %vm667_vm10, %v2611_v9, %v668_v22  ;;  %v1084_v56 = vsel %vm1082_vm12, %v2611_v9, %v668_v22  ;;  %v554_v42 = vsel %vm471_vm7, %v553_v14, %v552_v20  ;;  %v976_v33 = vand.u32 3, %v975_v37 }
  0xec   : > { %v673_v0 = vsel %vm666_vm8, %v669_v18, %v672_v23  ;;  %v1088_v57 = vsel %vm1081_vm14, %v1084_v56, %v1087_v40  ;;  %v557_v17 = vsel %vm3081_vm9, %v2758_v25, %v554_v42  ;;  %v434_v31 = vclz %v2469_v21  ;;  %v1201_v56 = vpop.permute.xlu1 %1200 }
  0xed   : > { %v674_v1 = vsel %vm664_vm6, nan, %v673_v0  ;;  %v1089_v28 = vsel %vm664_vm6, nan, %v1088_v57  ;;  %2614 = vcosq.f32 %v557_v17  ;;  %vm563_vm0 = vcmp.lt.s32.totalorder %v562_v53, 2 }
  0xee   : > { %2091 = vmatpush1.msra.mxu0 %v674_v1  ;;  %2168 = vmatpush1.msra.mxu1 %v1089_v28  ;;  %2616 = vsinq.f32 %v557_v17  ;;  %v2470_v46 = vadd.s32 4294967294, %v434_v31  ;;  %vm567_vm1 = vcmp.eq.s32.totalorder %v562_v53, 2  ;;  %vm981_vm2 = vcmp.eq.s32.totalorder %v976_v33, 2  ;;  %v1194_v31 = vld [vmem:[%s304_s14] sm:$0xff] }
  0xef   : > { %vm564_vm3 = vcmp.eq.s32.totalorder %v562_v53, 0  ;;  %vm978_vm4 = vcmp.eq.s32.totalorder %v976_v33, 0  ;;  %vm977_vm5 = vcmp.lt.s32.totalorder %v976_v33, 2  ;;  %vm561_vm6 = vweird.f32 %v2758_v25 }
  0xf0   : > { %vm2471_vm15 = vcmp.lt.s32.totalorder %v2470_v46, 0  ;;  %vm368_vm7 = vcmp.lt.s32.totalorder %v2756_v24, 0  ;;  %vm367_vm8 = vcmp.le.f32.partialorder %v366_v45, 0.7853982  ;;  %vm458_vm9 = vweird.f32 %v2756_v24  ;;  %v1206_v37 = vpop.permute.xlu1 %1205 }
  0xf1   : > { %v437_v38 = vsel %vm2471_vm15, 0, %v2470_v46 }
  0xf2   : > { %v438_v39 = vsub.s32 32, %v437_v38  ;;  %v442_v41 = vsub.s32 4294967266, %v437_v38  ;;  %v439_v48 = vshll.u32 %v430_v51, %v437_v38  ;;  %v452_v51 = vsub.s32 4, %v3074_v44 }
  0xf4   : > { %v440_v61 = vshrl.u32 %v422_v15, %v438_v39  ;;  %v443_v27 = vadd.s32 127, %v442_v41  ;;  %v453_v14 = vsel %vm368_vm7, %v452_v51, %v3074_v44  ;;  %v334_v44 = vld [vmem:[%s3656_s4] sm:$0x3]  ;;  %v1195_v15 = vld [vmem:[%s304_s14 + $0x8] sm:$0xff] }
  0xf5   : > { %v455_v23 = vsel %vm367_vm8, 0, %v453_v14  ;;  %v1212_v46 = vrot.slane %v334_v44, %v350_v7  ;;  %v1216_v41 = vrot.slane %v334_v44, %v354_v8 }
  0xf6   : > { %v441_v26 = vor.u32 %v440_v61, %v439_v48  ;;  %v444_v55 = vshll.u32 %v443_v27, 23  ;;  %v871_v40 = vadd.s32 3, %v455_v23  ;;  %v459_v32 = vand.u32 3, %v455_v23 }
  0xf7   : > { %v1219_v39 = vmul.f32 %v1212_v46, %v1201_v56  ;;  %v1221_v7 = vmul.f32 %v1212_v46, %v1206_v37  ;;  %v1220_v61 = vmul.f32 %v1216_v41, %v1201_v56 }
  0xf8   : > { %v445_v35 = vor.u32 4788187, %v444_v55  ;;  %v448_v62 = vcvt.s32.f32 %v441_v26  ;;  %v872_v36 = vand.u32 3, %v871_v40  ;;  %vm464_vm10 = vcmp.eq.s32.totalorder %v459_v32, 2 }
  0xf9   : > { %vm461_vm12 = vcmp.eq.s32.totalorder %v459_v32, 0  ;;  %vm460_vm14 = vcmp.lt.s32.totalorder %v459_v32, 2  ;;  %v3139_v48 = vmul.f32 6.2831855, %v1221_v7 }
  0xfa   : > { %v2615_v29 = vpop.eup %2614  ;;  %v446_v3 = vand.u32 2147483647, %v445_v35  ;;  %vm877_vm11 = vcmp.eq.s32.totalorder %v872_v36, 2  ;;  %vm874_vm13 = vcmp.eq.s32.totalorder %v872_v36, 0  ;;  %vm873_vm15 = vcmp.lt.s32.totalorder %v872_v36, 2 }
  0xfb   : > { %v2617_v43 = vpop.eup %2616  ;;  %v568_v59 = vxor.u32 2147483648, %v2615_v29  ;;  %v1436_v53 = vand.u32 2139095040, %v3139_v48 }
  0xfc   : > { %v565_v2 = vxor.u32 2147483648, %v2617_v43  ;;  %v449_v63 = vmul.f32 %v448_v62, %v446_v3 }
  0xfd   : > { %v569_v50 = vsel %vm567_vm1, %v568_v59, %v2617_v43  ;;  %v983_v10 = vsel %vm981_vm2, %v568_v59, %v2617_v43  ;;  %v1437_v26 = vshrl.u32 %v1436_v53, 23 }
  0xfe   : > { %v566_v19 = vsel %vm564_vm3, %v2615_v29, %v565_v2  ;;  %v980_v4 = vsel %vm978_vm4, %v2615_v29, %v565_v2  ;;  %v450_v12 = vxor.u32 2147483648, %v449_v63  ;;  %v1222_v29 = vmul.f32 %v1216_v41, %v1206_v37 }
  0xff   : > { %v570_v9 = vsel %vm563_vm0, %v566_v19, %v569_v50  ;;  %v984_v16 = vsel %vm977_vm5, %v980_v4, %v983_v10  ;;  %vm2055_vm0 = vcmask 130048   ;;  %v2508_v35 = vadd.s32 4294967169, %v1437_v26 }
 0x100   : > { %v571_v20 = vsel %vm561_vm6, nan, %v570_v9  ;;  %v985_v11 = vsel %vm561_vm6, nan, %v984_v16  ;;  %v451_v22 = vsel %vm368_vm7, %v450_v12, %v449_v63  ;;  %v3146_v2 = vmul.f32 6.2831855, %v1222_v29 }
 0x101   : > { %2092 = vmatprep.subr.mxu0 %v571_v20  ;;  %2169 = vmatprep.subr.mxu1 %v985_v11  ;;  %v454_v25 = vsel %vm367_vm8, %v2756_v24, %v451_v22  ;;  %v3137_v24 = vmul.f32 6.2831855, %v1219_v39  ;;  %v1443_v3 = vadd.s32 1, %v2508_v35  ;;  %v1433_v20 = vand.u32 2147483647, %v3139_v48 }
 0x102   : > { %2618 = vcosq.f32 %v454_v25  ;;  %v1539_v50 = vand.u32 2139095040, %v3146_v2 }
 0x103   : > { %2620 = vsinq.f32 %v454_v25  ;;  %v1230_v27 = vand.u32 2139095040, %v3137_v24  ;;  %vm1444_vm2 = vcmp.gt.s32.totalorder %v1443_v3, 0  ;;  %v1440_v23 = vand.u32 8388607, %v1433_v20 }
 0x104   : > { %v1445_v4 = vsel %vm1444_vm2, %v1443_v3, 0  ;;  %v1540_v63 = vshrl.u32 %v1539_v50, 23 }
 0x105   : > { %v1231_v33 = vshrl.u32 %v1230_v27, 23  ;;  %v1447_v16 = vand.u32 31, %v1445_v4 }
 0x106   : > { %v2512_v11 = vadd.s32 4294967169, %v1540_v63 }
 0x107   : > { %v2500_v8 = vadd.s32 4294967169, %v1231_v33  ;;  %v3155_v22 = vsub.s32 32, %v1447_v16  ;;  %v1462_v56 = vshll.u32 %v2666_v54, %v1447_v16  ;;  %v1459_v44 = vshll.u32 %v2664_v49, %v1447_v16 }
 0x108   : > { %v1546_v40 = vadd.s32 1, %v2512_v11 }
 0x109   : > { %v1237_v59 = vadd.s32 1, %v2500_v8 }
 0x10a   : > { %vm1547_vm5 = vcmp.gt.s32.totalorder %v1546_v40, 0 }
 0x10b   : > { %vm1238_vm1 = vcmp.gt.s32.totalorder %v1237_v59, 0  ;;  %v1548_v7 = vsel %vm1547_vm5, %v1546_v40, 0 }
 0x10c   : > { %v1239_v19 = vsel %vm1238_vm1, %v1237_v59, 0  ;;  %v1550_v35 = vand.u32 31, %v1548_v7  ;;  %v1227_v59 = vand.u32 2147483647, %v3137_v24 }
 0x10d   : > { %v3149_v9 = vand.u32 31, %v1239_v19  ;;  %v3157_v25 = vshrl.u32 %v1239_v19, 5 }
 0x10f   : > { %v2619_v18 = vpop.eup %2618  ;;  %v3153_v51 = vsub.s32 32, %v3149_v9  ;;  %v1253_v32 = vshll.u32 %v2664_v49, %v3149_v9  ;;  %vm1262_vm4 = vcmp.lt.s32.totalorder %v3157_v25, 4 }
 0x110   : > { %v2621_v42 = vpop.eup %2620  ;;  %v465_v45 = vxor.u32 2147483648, %v2619_v18 }
 0x111   : > { %v462_v0 = vxor.u32 2147483648, %v2621_v42  ;;  %v1254_v36 = vshrl.u32 %v2666_v54, %v3153_v51  ;;  %v1245_v40 = vshrl.u32 %v2663_v47, %v3153_v51 }
 0x112   : > { %v466_v57 = vsel %vm464_vm10, %v465_v45, %v2621_v42  ;;  %v879_v17 = vsel %vm877_vm11, %v465_v45, %v2621_v42  ;;  %v1463_v42 = vshrl.u32 %v2668_v13, %v3155_v22  ;;  %v1257_v45 = vshrl.u32 %v2668_v13, %v3153_v51 }
 0x113   : > { %v463_v21 = vsel %vm461_vm12, %v2619_v18, %v462_v0  ;;  %v876_v1 = vsel %vm874_vm13, %v2619_v18, %v462_v0  ;;  %v1256_v18 = vshll.u32 %v2666_v54, %v3149_v9  ;;  %v3174_v0 = vshrl.u32 %v1445_v4, 5 }
 0x114   : > { %v467_v28 = vsel %vm460_vm14, %v463_v21, %v466_v57  ;;  %v880_v30 = vsel %vm873_vm15, %v876_v1, %v879_v17  ;;  %v1460_v57 = vshrl.u32 %v2666_v54, %v3155_v22  ;;  %v1441_v21 = vor.u32 8388608, %v1440_v23 }
 0x115   : > { %v468_v34 = vsel %vm458_vm9, nan, %v467_v28  ;;  %v881_v38 = vsel %vm458_vm9, nan, %v880_v30  ;;  %v1453_v1 = vshll.u32 %v2663_v47, %v1447_v16  ;;  %v1454_v28 = vshrl.u32 %v2665_v52, %v3155_v22 }
 0x116   : > { %2093 = vmatpush1.msra.mxu0 %v468_v34  ;;  %2170 = vmatpush1.msra.mxu1 %v881_v38  ;;  %v1456_v30 = vshll.u32 %v2665_v52, %v1447_v16  ;;  %v3189_v46 = vor.u32 %v1254_v36, %v1253_v32  ;;  %v1450_v34 = vshll.u32 %v2667_v58, %v1447_v16  ;;  %vm1468_vm6 = vcmp.lt.s32.totalorder %v3174_v0, 4 }
 0x117   : > { %2532 = vmatmul.mubr.msk.f32.vlgmr.msra.gmra.mxu0 %vm2055_vm0, %v1194_v31  ;;  %2534 = vmatmul.mubr.msk.f32.vlgmr.msra.gmra.mxu1 %vm2055_vm0, %v1194_v31  ;;  %v1457_v31 = vshrl.u32 %v2664_v49, %v3155_v22  ;;  %v1451_v38 = vshrl.u32 %v2663_v47, %v3155_v22  ;;  %v1464_v37 = vor.u32 %v1463_v42, %v1462_v56  ;;  %vm1465_vm7 = vcmp.lt.s32.totalorder %v3174_v0, 1 }
 0x118   : > { %2132 = vmatprep.mubr.f32.mxu0 %v2669_v60  ;;  %2209 = vmatprep.mubr.f32.mxu1 %v2669_v60  ;;  %v3143_v60 = vmul.f32 6.2831855, %v1220_v61  ;;  %v1461_v39 = vor.u32 %v1460_v57, %v1459_v44  ;;  %v3205_v26 = vor.u32 %v1454_v28, %v1453_v1  ;;  %vm1467_vm8 = vcmp.lt.s32.totalorder %v3174_v0, 3 }
 0x119   : > { %v3208_v8 = vor.u32 %v1451_v38, %v1450_v34  ;;  %v1478_v29 = vsel %vm1468_vm6, %v1464_v37, 1326507024  ;;  %v1268_v3 = vsel %vm1262_vm4, %v3189_v46, 920167782  ;;  %vm1466_vm10 = vcmp.lt.s32.totalorder %v3174_v0, 2 }
 0x11a   : > { %v1333_v55 = vand.u32 2139095040, %v3143_v60  ;;  %v1479_v4 = vsel %vm1467_vm8, %v1461_v39, %v1478_v29  ;;  %v1244_v23 = vshll.u32 %v2667_v58, %v3149_v9  ;;  %v1247_v32 = vshll.u32 %v2663_v47, %v3149_v9 }
 0x11b   : > { %2533 = vmatmul.mubr.msk.f32.gmra.mxu0 %vm2055_vm0, %v1195_v15  ;;  %2535 = vmatmul.mubr.msk.f32.gmra.mxu1 %vm2055_vm0, %v1195_v15  ;;  %v1258_v15 = vor.u32 %v1257_v45, %v1256_v18  ;;  %v1473_v16 = vsel %vm1465_vm7, %v3208_v8, %v3205_v26  ;;  %v1248_v36 = vshrl.u32 %v2665_v52, %v3153_v51  ;;  %v1234_v45 = vand.u32 8388607, %v1227_v59 }
 0x11c   : > { %v1334_v43 = vshrl.u32 %v1333_v55, 23  ;;  %v1458_v55 = vor.u32 %v1457_v31, %v1456_v30  ;;  %v3267_v57 = vshrl.u32 %v1548_v7, 5  ;;  %v1251_v1 = vshrl.u32 %v2664_v49, %v3153_v51 }
 0x11d   : > { %v1272_v63 = vsel %vm1262_vm4, %v1258_v15, 1326507024  ;;  %v3275_v28 = vshrl.u32 %v2667_v58, %v3155_v22  ;;  %v1562_v31 = vshll.u32 %v2664_v49, %v1550_v35  ;;  %v3290_v37 = vor.u32 %v1245_v40, %v1244_v23 }
 0x11e   : > { %v2504_v62 = vadd.s32 4294967169, %v1334_v43  ;;  %v1474_v43 = vsel %vm1468_vm6, %v1461_v39, 920167782  ;;  %v1477_v19 = vsel %vm1465_vm7, %v3205_v26, %v1458_v55  ;;  %v3279_v30 = vsel %vm1468_vm6, %v1458_v55, 2102212464 }
 0x11f   : > { %v1475_v11 = vsel %vm1467_vm8, %v1458_v55, %v1474_v43  ;;  %v3259_v42 = vsel %vm1466_vm10, %v1477_v19, %v1479_v4  ;;  %v3292_v15 = vor.u32 %v1248_v36, %v1247_v32  ;;  %v1565_v7 = vshll.u32 %v2666_v54, %v1550_v35 }
 0x120   : > { %v1340_v10 = vadd.s32 1, %v2504_v62  ;;  %v3265_v44 = vsel %vm1466_vm10, %v1473_v16, %v1475_v11  ;;  %vm1259_vm11 = vcmp.lt.s32.totalorder %v3157_v25, 1  ;;  %vm1571_vm12 = vcmp.lt.s32.totalorder %v3267_v57, 4 }
 0x121   : > { %vm1260_vm13 = vcmp.lt.s32.totalorder %v3157_v25, 2  ;;  %vm1261_vm14 = vcmp.lt.s32.totalorder %v3157_v25, 3  ;;  %v1536_v16 = vand.u32 2147483647, %v3146_v2  ;;  %v1553_v40 = vshll.u32 %v2667_v58, %v1550_v35 }
 0x122   : > { %vm1341_vm3 = vcmp.gt.s32.totalorder %v1340_v10, 0  ;;  %v1556_v36 = vshll.u32 %v2663_v47, %v1550_v35  ;;  %vm1568_vm1 = vcmp.lt.s32.totalorder %v3267_v57, 1  ;;  %vm1570_vm2 = vcmp.lt.s32.totalorder %v3267_v57, 3 }
 0x123   : > { %v1342_v12 = vsel %vm1341_vm3, %v1340_v10, 0  ;;  %v3221_v10 = vshll.u32 %v1441_v21, 8  ;;  %v1250_v21 = vshll.u32 %v2665_v52, %v3149_v9  ;;  %vm1569_vm5 = vcmp.lt.s32.totalorder %v3267_v57, 2 }
 0x124   : > { %v3159_v14 = vand.u32 31, %v1342_v12  ;;  %v3203_v33 = vshrl.u32 %v1342_v12, 5  ;;  %v3238_v12 = vsub.s32 32, %v1550_v35 }
 0x125   : > { %v3286_v38 = vmul.u32.u64.low %v3221_v10, %v3259_v42  ;;  %v3287_v9 = vmul.u32.u64.high %v3221_v10, %v3259_v42, %v3286_v38  ;;  %v3296_v22 = vmul.u32.u64.low %v3221_v10, %v3265_v44  ;;  %v3297_v39 = vmul.u32.u64.high %v3221_v10, %v3265_v44, %v3296_v22 }
 0x126   : > { %v3181_v17 = vsub.s32 32, %v3159_v14  ;;  %v1356_v41 = vshll.u32 %v2664_v49, %v3159_v14  ;;  %v1359_v27 = vshll.u32 %v2666_v54, %v3159_v14  ;;  %vm1365_vm9 = vcmp.lt.s32.totalorder %v3203_v33, 4 }
 0x127   : > { %v1563_v34 = vshrl.u32 %v2666_v54, %v3238_v12  ;;  %v1566_v55 = vshrl.u32 %v2668_v13, %v3238_v12  ;;  %v1347_v29 = vshll.u32 %v2667_v58, %v3159_v14  ;;  %v1353_v19 = vshll.u32 %v2665_v52, %v3159_v14 }
 0x128   : > { %v1357_v61 = vshrl.u32 %v2666_v54, %v3181_v17  ;;  %v1360_v53 = vshrl.u32 %v2668_v13, %v3181_v17  ;;  %v1267_v54 = vsel %vm1259_vm11, %v3290_v37, %v3292_v15  ;;  %v1348_v43 = vshrl.u32 %v2663_v47, %v3181_v17 }
 0x129   : > { %v1351_v13 = vshrl.u32 %v2665_v52, %v3181_v17  ;;  %v1354_v4 = vshrl.u32 %v2664_v49, %v3181_v17  ;;  %v1554_v32 = vshrl.u32 %v2663_v47, %v3238_v12  ;;  %v1559_v42 = vshll.u32 %v2665_v52, %v1550_v35 }
 0x12a   : > { %v3219_v62 = vor.u32 %v1357_v61, %v1356_v41  ;;  %v1361_v50 = vor.u32 %v1360_v53, %v1359_v27  ;;  %v1235_v41 = vor.u32 8388608, %v1234_v45  ;;  %v1252_v61 = vor.u32 %v1251_v1, %v1250_v21 }
 0x12b   : > { %v1330_v27 = vand.u32 2147483647, %v3143_v60  ;;  %v1564_v53 = vor.u32 %v1563_v34, %v1562_v31  ;;  %v1560_v45 = vshrl.u32 %v2664_v49, %v3238_v12  ;;  %v1567_v44 = vor.u32 %v1566_v55, %v1565_v7 }
 0x12c   : > { %v3251_v18 = vsel %vm1365_vm9, %v3219_v62, 920167782  ;;  %v3255_v56 = vsel %vm1365_vm9, %v1361_v50, 1326507024  ;;  %v1350_v50 = vshll.u32 %v2663_v47, %v3159_v14  ;;  %v1269_v11 = vsel %vm1261_vm14, %v1252_v61, %v1268_v3 }
 0x12d   : > { %v1337_v23 = vand.u32 8388607, %v1330_v27  ;;  %v1557_v14 = vshrl.u32 %v2665_v52, %v3238_v12  ;;  %v1577_v3 = vsel %vm1571_vm12, %v1564_v53, 920167782  ;;  %v1271_v21 = vsel %vm1259_vm11, %v3292_v15, %v1252_v61 }
 0x12e   : > { %v1273_v47 = vsel %vm1261_vm14, %v3189_v46, %v1272_v63  ;;  %v1349_v1 = vor.u32 %v1348_v43, %v1347_v29  ;;  %v1352_v31 = vor.u32 %v1351_v13, %v1350_v50  ;;  %v1355_v34 = vor.u32 %v1354_v4, %v1353_v19 }
 0x12f   : > { %v1543_v52 = vand.u32 8388607, %v1536_v16  ;;  %v1270_v49 = vsel %vm1260_vm13, %v1267_v54, %v1269_v11  ;;  %v3350_v35 = vshll.u32 %v1235_v41, 8  ;;  %vm1362_vm15 = vcmp.lt.s32.totalorder %v3203_v33, 1 }
 0x130   : > { %vm1364_vm0 = vcmp.lt.s32.totalorder %v3203_v33, 3  ;;  %v1338_v38 = vor.u32 8388608, %v1337_v23  ;;  %v1555_v7 = vor.u32 %v1554_v32, %v1553_v40  ;;  %v1558_v55 = vor.u32 %v1557_v14, %v1556_v36 }
 0x131   : > { %v1561_v5 = vor.u32 %v1560_v45, %v1559_v42  ;;  %v1581_v46 = vsel %vm1571_vm12, %v1567_v44, 1326507024  ;;  %v1274_v63 = vsel %vm1260_vm13, %v1271_v21, %v1273_v47  ;;  %vm1363_vm3 = vcmp.lt.s32.totalorder %v3203_v33, 2 }
 0x132   : > { %v1370_v41 = vsel %vm1362_vm15, %v1349_v1, %v1352_v31  ;;  %v1372_v54 = vsel %vm1364_vm0, %v1355_v34, %v3251_v18  ;;  %v1544_v29 = vor.u32 8388608, %v1543_v52  ;;  %v1374_v13 = vsel %vm1362_vm15, %v1352_v31, %v1355_v34 }
 0x133   : > { %v3367_v43 = vmul.u32.u64.low %v3350_v35, %v1270_v49  ;;  %v3368_v50 = vmul.u32.u64.high %v3350_v35, %v1270_v49, %v3367_v43  ;;  %v1376_v19 = vsel %vm1364_vm0, %v3219_v62, %v3255_v56  ;;  %v1378_v4 = vshll.u32 %v1338_v38, 8 }
 0x134   : > { %v1576_v18 = vsel %vm1568_vm1, %v1555_v7, %v1558_v55  ;;  %v1578_v11 = vsel %vm1570_vm2, %v1561_v5, %v1577_v3  ;;  %v1243_v23 = vshrl.u32 %v2667_v58, %v3153_v51  ;;  %v1373_v40 = vsel %vm1363_vm3, %v1370_v41, %v1372_v54 }
 0x135   : > { %v1580_v32 = vsel %vm1568_vm1, %v1558_v55, %v1561_v5  ;;  %v1582_v62 = vsel %vm1570_vm2, %v1564_v53, %v1581_v46  ;;  %v3391_v56 = vmul.u32.u64.low %v3350_v35, %v1274_v63  ;;  %v3392_v36 = vmul.u32.u64.high %v3350_v35, %v1274_v63, %v3391_v56 }
 0x136   : > { %v1377_v14 = vsel %vm1363_vm3, %v1374_v13, %v1376_v19  ;;  %v1584_v42 = vshll.u32 %v1544_v29, 8  ;;  %v1469_v51 = vsel %vm1465_vm7, %v3275_v28, %v3208_v8  ;;  %v1264_v45 = vsel %vm1262_vm4, %v1252_v61, 2102212464 }
 0x137   : > { %v1579_v44 = vsel %vm1569_vm5, %v1576_v18, %v1578_v11  ;;  %v1471_v53 = vsel %vm1467_vm8, %v3205_v26, %v3279_v30  ;;  %v3408_v3 = vmul.u32.u64.low %v1378_v4, %v1373_v40  ;;  %v3409_v21 = vmul.u32.u64.high %v1378_v4, %v1373_v40, %v3408_v3 }
 0x138   : > { %v1583_v47 = vsel %vm1569_vm5, %v1580_v32, %v1582_v62  ;;  %v1263_v8 = vsel %vm1259_vm11, %v1243_v23, %v3290_v37  ;;  %v1346_v28 = vshrl.u32 %v2667_v58, %v3181_v17  ;;  %v1265_v26 = vsel %vm1261_vm14, %v3292_v15, %v1264_v45 }
 0x139   : > { %v3419_v61 = vmul.u32.u64.low %v1378_v4, %v1377_v14  ;;  %v3420_v52 = vmul.u32.u64.high %v1378_v4, %v1377_v14, %v3419_v61  ;;  %v1367_v30 = vsel %vm1365_vm9, %v1355_v34, 2102212464  ;;  %v1552_v37 = vshrl.u32 %v2667_v58, %v3238_v12 }
 0x13a   : > { %v3427_v49 = vmul.u32.u64.low %v1584_v42, %v1579_v44  ;;  %v3428_v38 = vmul.u32.u64.high %v1584_v42, %v1579_v44, %v3427_v49  ;;  %v3433_v46 = vmul.u32.u64.low %v1584_v42, %v1583_v47  ;;  %v3434_v63 = vmul.u32.u64.high %v1584_v42, %v1583_v47, %v3433_v46 }
 0x13b   : > { %v1472_v17 = vsel %vm1466_vm10, %v1469_v51, %v1471_v53  ;;  %vm1490_vm4 = vc.u32 %v3287_v9, %v3296_v22  ;;  %v1491_v15 = vadd.s32 1, %v3297_v39  ;;  %v1573_v34 = vsel %vm1571_vm12, %v1561_v5, 2102212464 }
 0x13c   : > { %v1266_v41 = vsel %vm1260_vm13, %v1263_v8, %v1265_v26  ;;  %v1285_v54 = vadd.s32 1, %v3368_v50  ;;  %v1366_v58 = vsel %vm1362_vm15, %v1346_v28, %v1349_v1  ;;  %v1368_v0 = vsel %vm1364_vm0, %v1352_v31, %v1367_v30 }
 0x13d   : > { %vm1284_vm6 = vc.u32 %v3392_v36, %v3367_v43  ;;  %v1488_v12 = vmul.u32 %v3221_v10, %v1472_v17  ;;  %v1572_v29 = vsel %vm1568_vm1, %v1552_v37, %v1555_v7  ;;  %v1574_v5 = vsel %vm1570_vm2, %v1558_v55, %v1573_v34 }
 0x13e   : > { %v1492_v25 = vsel %vm1490_vm4, %v1491_v15, %v3297_v39  ;;  %v1282_v13 = vmul.u32 %v3350_v35, %v1266_v41  ;;  %v1369_v1 = vsel %vm1363_vm3, %v1366_v58, %v1368_v0  ;;  %v1388_v31 = vadd.s32 1, %v3409_v21 }
 0x13f   : > { %v1286_v19 = vsel %vm1284_vm6, %v1285_v54, %v3368_v50  ;;  %vm1387_vm7 = vc.u32 %v3420_v52, %v3408_v3  ;;  %v1575_v10 = vsel %vm1569_vm5, %v1572_v29, %v1574_v5  ;;  %v1594_v7 = vadd.s32 1, %v3428_v38 }
 0x140   : > { %v1493_v55 = vadd.s32 %v1492_v25, %v1488_v12  ;;  %v1385_v18 = vmul.u32 %v1378_v4, %v1369_v1  ;;  %vm1593_vm8 = vc.u32 %v3434_v63, %v3427_v49  ;;  %v1287_v39 = vadd.s32 %v1286_v19, %v1282_v13 }
 0x141   : > { %v1389_v33 = vsel %vm1387_vm7, %v1388_v31, %v3409_v21  ;;  %v1591_v35 = vmul.u32 %v1584_v42, %v1575_v10  ;;  %v1595_v11 = vsel %vm1593_vm8, %v1594_v7, %v3428_v38  ;;  %v1489_v10 = vadd.s32 %v3296_v22, %v3287_v9 }
 0x142   : > { %v1494_v50 = vadd.s32 536870912, %v1493_v55  ;;  %v1390_v23 = vadd.s32 %v1389_v33, %v1385_v18  ;;  %v1288_v40 = vadd.s32 536870912, %v1287_v39  ;;  %v1283_v33 = vadd.s32 %v3367_v43, %v3392_v36 }
 0x143   : > { %v1596_v32 = vadd.s32 %v1595_v11, %v1591_v35  ;;  %vm1435_vm13 = vcmp.lt.s32.totalorder %v3139_v48, 0  ;;  %vm1229_vm14 = vcmp.lt.s32.totalorder %v3137_v24, 0  ;;  %vm3498_vm15 = vcmp.le.f32.partialorder %v1433_v20, 0.7853982 }
 0x144   : > { %v3472_v62 = vshrl.u32 %v1494_v50, 30  ;;  %v1391_v57 = vadd.s32 536870912, %v1390_v23  ;;  %v3474_v56 = vshrl.u32 %v1288_v40, 30  ;;  %vm3504_vm0 = vcmp.le.f32.partialorder %v1227_v59, 0.7853982 }
 0x145   : > { %v1597_v14 = vadd.s32 536870912, %v1596_v32  ;;  %vm1332_vm1 = vcmp.lt.s32.totalorder %v3143_v60, 0  ;;  %vm1538_vm2 = vcmp.lt.s32.totalorder %v3146_v2, 0  ;;  %vm3521_vm3 = vcmp.le.f32.partialorder %v1330_v27, 0.7853982 }
 0x146   : > { %v1496_v4 = vshll.u32 %v3472_v62, 30  ;;  %v3477_v51 = vshrl.u32 %v1391_v57, 30  ;;  %v1290_v45 = vshll.u32 %v3474_v56, 30  ;;  %v1386_v57 = vadd.s32 %v3408_v3, %v3420_v52 }
 0x147   : > { %v3480_v44 = vshrl.u32 %v1597_v14, 30  ;;  %v1313_v20 = vsub.s32 4, %v3474_v56  ;;  %vm3530_vm5 = vcmp.le.f32.partialorder %v1536_v16, 0.7853982 }
 0x148   : > { %v1497_v42 = vsub.s32 %v1493_v55, %v1496_v4  ;;  %v1393_v53 = vshll.u32 %v3477_v51, 30  ;;  %v1291_v21 = vsub.s32 %v1287_v39, %v1290_v45  ;;  %v1416_v27 = vsub.s32 4, %v3477_v51 }
 0x149   : > { %v1599_v47 = vshll.u32 %v3480_v44, 30 }
 0x14a   : > { %v1499_v8 = vsub.s32 0, %v1497_v42  ;;  %v1394_v28 = vsub.s32 %v1390_v23, %v1393_v53  ;;  %v1293_v61 = vsub.s32 0, %v1291_v21  ;;  %v1592_v53 = vadd.s32 %v3427_v49, %v3434_v63 }
 0x14b   : > { %v1600_v26 = vsub.s32 %v1596_v32, %v1599_v47 }
 0x14c   : > { %v2509_v30 = vmin.u32 %v1499_v8, %v1497_v42  ;;  %v1396_v38 = vsub.s32 0, %v1394_v28  ;;  %v2501_v37 = vmin.u32 %v1293_v61, %v1291_v21 }
 0x14d   : > { %v1602_v46 = vsub.s32 0, %v1600_v26 }
 0x14e   : > { %v1501_v17 = vclz %v2509_v30  ;;  %v2505_v15 = vmin.u32 %v1396_v38, %v1394_v28  ;;  %v1295_v34 = vclz %v2501_v37 }
 0x14f   : > { %v2513_v41 = vmin.u32 %v1602_v46, %v1600_v26 }
 0x150   : > { %v2510_v54 = vadd.s32 4294967294, %v1501_v17  ;;  %v1398_v58 = vclz %v2505_v15  ;;  %v2502_v0 = vadd.s32 4294967294, %v1295_v34 }
 0x151   : > { %v1604_v12 = vclz %v2513_v41 }
 0x152   : > { %vm2511_vm9 = vcmp.lt.s32.totalorder %v2510_v54, 0  ;;  %v2506_v29 = vadd.s32 4294967294, %v1398_v58  ;;  %vm2503_vm10 = vcmp.lt.s32.totalorder %v2502_v0, 0 }
 0x153   : > { %v2514_v5 = vadd.s32 4294967294, %v1604_v12  ;;  %v1504_v25 = vsel %vm2511_vm9, 0, %v2510_v54  ;;  %v1298_v13 = vsel %vm2503_vm10, 0, %v2502_v0 }
 0x154   : > { %vm2507_vm11 = vcmp.lt.s32.totalorder %v2506_v29, 0  ;;  %v1509_v1 = vsub.s32 4294967266, %v1504_v25  ;;  %v1303_v31 = vsub.s32 4294967266, %v1298_v13  ;;  %v1505_v7 = vsub.s32 32, %v1504_v25 }
 0x155   : > { %vm2515_vm12 = vcmp.lt.s32.totalorder %v2514_v5, 0  ;;  %v1401_v19 = vsel %vm2507_vm11, 0, %v2506_v29  ;;  %v1299_v35 = vsub.s32 32, %v1298_v13  ;;  %v1506_v23 = vshll.u32 %v1497_v42, %v1504_v25 }
 0x156   : > { %v1607_v55 = vsel %vm2515_vm12, 0, %v2514_v5  ;;  %v1510_v18 = vadd.s32 127, %v1509_v1  ;;  %v1406_v39 = vsub.s32 4294967266, %v1401_v19  ;;  %v1304_v11 = vadd.s32 127, %v1303_v31 }
 0x157   : > { %v1612_v50 = vsub.s32 4294967266, %v1607_v55  ;;  %v1507_v40 = vshrl.u32 %v1489_v10, %v1505_v7  ;;  %v1402_v14 = vsub.s32 32, %v1401_v19  ;;  %v1300_v45 = vshll.u32 %v1291_v21, %v1298_v13 }
 0x158   : > { %v1511_v32 = vshll.u32 %v1510_v18, 23  ;;  %v1407_v4 = vadd.s32 127, %v1406_v39  ;;  %v1301_v9 = vshrl.u32 %v1283_v33, %v1299_v35  ;;  %v1305_v22 = vshll.u32 %v1304_v11, 23 }
 0x159   : > { %v1608_v47 = vsub.s32 32, %v1607_v55  ;;  %v1613_v8 = vadd.s32 127, %v1612_v50  ;;  %v1508_v43 = vor.u32 %v1507_v40, %v1506_v23  ;;  %v1403_v61 = vshll.u32 %v1394_v28, %v1401_v19 }
 0x15a   : > { %v1512_v36 = vor.u32 4788187, %v1511_v32  ;;  %v1404_v30 = vshrl.u32 %v1386_v57, %v1402_v14  ;;  %v1408_v42 = vshll.u32 %v1407_v4, 23  ;;  %v1302_v38 = vor.u32 %v1301_v9, %v1300_v45 }
 0x15b   : > { %v1306_v37 = vor.u32 4788187, %v1305_v22  ;;  %v1609_v46 = vshll.u32 %v1600_v26, %v1607_v55  ;;  %v1610_v17 = vshrl.u32 %v1592_v53, %v1608_v47  ;;  %v1614_v3 = vshll.u32 %v1613_v8, 23 }
 0x15c   : > { %v1513_v52 = vand.u32 2147483647, %v1512_v36  ;;  %v1515_v15 = vcvt.s32.f32 %v1508_v43  ;;  %v1405_v21 = vor.u32 %v1404_v30, %v1403_v61  ;;  %v1409_v34 = vor.u32 4788187, %v1408_v42 }
 0x15d   : > { %v1307_v41 = vand.u32 2147483647, %v1306_v37  ;;  %v1309_v54 = vcvt.s32.f32 %v1302_v38  ;;  %v1611_v58 = vor.u32 %v1610_v17, %v1609_v46  ;;  %v1615_v49 = vor.u32 4788187, %v1614_v3 }
 0x15e   : > { %v1516_v63 = vmul.f32 %v1515_v15, %v1513_v52  ;;  %v1410_v0 = vand.u32 2147483647, %v1409_v34  ;;  %v1412_v12 = vcvt.s32.f32 %v1405_v21  ;;  %v1519_v11 = vsub.s32 4, %v3472_v62 }
 0x15f   : > { %v1310_v29 = vmul.f32 %v1309_v54, %v1307_v41  ;;  %v1616_v28 = vand.u32 2147483647, %v1615_v49  ;;  %v1618_v5 = vcvt.s32.f32 %v1611_v58  ;;  %v1314_v32 = vsel %vm1229_vm14, %v1313_v20, %v3474_v56 }
 0x160   : > { %v1517_v25 = vxor.u32 2147483648, %v1516_v63  ;;  %v1413_v13 = vmul.f32 %v1412_v12, %v1410_v0  ;;  %v1520_v57 = vsel %vm1435_vm13, %v1519_v11, %v3472_v62  ;;  %v1316_v14 = vsel %vm3504_vm0, 0, %v1314_v32 }
 0x161   : > { %v1311_v26 = vxor.u32 2147483648, %v1310_v29  ;;  %v1619_v1 = vmul.f32 %v1618_v5, %v1616_v28  ;;  %v1417_v4 = vsel %vm1332_vm1, %v1416_v27, %v3477_v51  ;;  %v1622_v56 = vsub.s32 4, %v3480_v44 }
 0x162   : > { %v1518_v31 = vsel %vm1435_vm13, %v1517_v25, %v1516_v63  ;;  %v1414_v19 = vxor.u32 2147483648, %v1413_v13  ;;  %v1522_v45 = vsel %vm3498_vm15, 0, %v1520_v57  ;;  %v1732_v9 = vadd.s32 3, %v1316_v14 }
 0x163   : > { %v1312_v55 = vsel %vm1229_vm14, %v1311_v26, %v1310_v29  ;;  %v1620_v18 = vxor.u32 2147483648, %v1619_v1  ;;  %v1521_v39 = vsel %vm3498_vm15, %v3139_v48, %v1518_v31  ;;  %v1419_v22 = vsel %vm3521_vm3, 0, %v1417_v4 }
 0x164   : > { %v1315_v59 = vsel %vm3504_vm0, %v3137_v24, %v1312_v55  ;;  %v1415_v35 = vsel %vm1332_vm1, %v1414_v19, %v1413_v13  ;;  %2622 = vcosq.f32 %v1521_v39  ;;  %v1320_v62 = vand.u32 3, %v1316_v14 }
 0x165   : > { %v1621_v23 = vsel %vm1538_vm2, %v1620_v18, %v1619_v1  ;;  %2624 = vcosq.f32 %v1315_v59  ;;  %v1418_v40 = vsel %vm3521_vm3, %v3143_v60, %v1415_v35  ;;  %v1940_v53 = vadd.s32 3, %v1522_v45 }
 0x166   : > { %2626 = vsinq.f32 %v1315_v59  ;;  %v1624_v16 = vsel %vm3530_vm5, %v3146_v2, %v1621_v23  ;;  %v1623_v47 = vsel %vm1538_vm2, %v1622_v56, %v3480_v44  ;;  %v1836_v8 = vadd.s32 3, %v1419_v22 }
 0x167   : > { %2628 = vsinq.f32 %v1521_v39  ;;  %v1733_v51 = vand.u32 3, %v1732_v9  ;;  %v3562_v36 = vand.u32 3, %v1522_v45  ;;  %v1625_v61 = vsel %vm3530_vm5, 0, %v1623_v47 }
 0x168   : > { %2630 = vcosq.f32 %v1418_v40  ;;  %vm1321_vm4 = vcmp.lt.s32.totalorder %v1320_v62, 2  ;;  %v3566_v42 = vand.u32 3, %v1940_v53  ;;  %vm1322_vm6 = vcmp.eq.s32.totalorder %v1320_v62, 0 }
 0x169   : > { %2632 = vsinq.f32 %v1418_v40  ;;  %vm1325_vm7 = vcmp.eq.s32.totalorder %v1320_v62, 2  ;;  %v3568_v37 = vand.u32 3, %v1419_v22  ;;  %v3570_v46 = vand.u32 3, %v1836_v8 }
 0x16a   : > { %2634 = vcosq.f32 %v1624_v16  ;;  %vm1735_vm9 = vcmp.eq.s32.totalorder %v1733_v51, 0  ;;  %vm1738_vm10 = vcmp.eq.s32.totalorder %v1733_v51, 2  ;;  %v2044_v17 = vadd.s32 3, %v1625_v61 }
 0x16b   : > { %2636 = vsinq.f32 %v1624_v16  ;;  %vm1528_vm12 = vcmp.eq.s32.totalorder %v3562_v36, 0  ;;  %vm1531_vm13 = vcmp.eq.s32.totalorder %v3562_v36, 2  ;;  %vm1942_vm15 = vcmp.lt.s32.totalorder %v3566_v42, 2 }
 0x16c   : > { %vm1943_vm0 = vcmp.eq.s32.totalorder %v3566_v42, 0  ;;  %vm1946_vm1 = vcmp.eq.s32.totalorder %v3566_v42, 2  ;;  %vm1425_vm3 = vcmp.eq.s32.totalorder %v3568_v37, 0  ;;  %vm1428_vm5 = vcmp.eq.s32.totalorder %v3568_v37, 2 }
 0x16d   : > { %vm1839_vm14 = vcmp.eq.s32.totalorder %v3570_v46, 0  ;;  %vm1842_vm8 = vcmp.eq.s32.totalorder %v3570_v46, 2  ;;  %v1629_v49 = vand.u32 3, %v1625_v61  ;;  %v2045_v63 = vand.u32 3, %v2044_v17 }
 0x16f   : > { %vm2047_vm11 = vcmp.eq.s32.totalorder %v2045_v63, 0  ;;  %vm2050_vm2 = vcmp.eq.s32.totalorder %v2045_v63, 2 }
 0x171   : > { %v2623_v43 = vpop.eup %2622 }
 0x172   : > { %v2625_v30 = vpop.eup %2624  ;;  %v1532_v15 = vxor.u32 2147483648, %v2623_v43 }
 0x173   : > { %v2627_v38 = vpop.eup %2626  ;;  %v1326_v52 = vxor.u32 2147483648, %v2625_v30 }
 0x174   : > { %v2629_v44 = vpop.eup %2628  ;;  %v1323_v34 = vxor.u32 2147483648, %v2627_v38 }
 0x175   : > { %v2631_v3 = vpop.eup %2630  ;;  %v1529_v54 = vxor.u32 2147483648, %v2629_v44  ;;  %v1327_v0 = vsel %vm1325_vm7, %v1326_v52, %v2627_v38  ;;  %v1740_v12 = vsel %vm1738_vm10, %v1326_v52, %v2627_v38  ;;  %v1533_v29 = vsel %vm1531_vm13, %v1532_v15, %v2629_v44 }
 0x176   : > { %v2633_v21 = vpop.eup %2632  ;;  %v1948_v28 = vsel %vm1946_vm1, %v1532_v15, %v2629_v44  ;;  %v1324_v5 = vsel %vm1322_vm6, %v2625_v30, %v1323_v34  ;;  %v1737_v25 = vsel %vm1735_vm9, %v2625_v30, %v1323_v34  ;;  %v1429_v26 = vxor.u32 2147483648, %v2631_v3 }
 0x177   : > { %v2635_v41 = vpop.eup %2634  ;;  %v1426_v13 = vxor.u32 2147483648, %v2633_v21  ;;  %v1530_v1 = vsel %vm1528_vm12, %v2623_v43, %v1529_v54  ;;  %v1945_v31 = vsel %vm1943_vm0, %v2623_v43, %v1529_v54  ;;  %vm1631_vm7 = vcmp.eq.s32.totalorder %v1629_v49, 0 }
 0x178   : > { %v2637_v58 = vpop.eup %2636  ;;  %v1635_v10 = vxor.u32 2147483648, %v2635_v41  ;;  %vm1634_vm10 = vcmp.eq.s32.totalorder %v1629_v49, 2  ;;  %v1328_v7 = vsel %vm1321_vm4, %v1324_v5, %v1327_v0  ;;  %vm3674_vm13 = vcmp.lt.s32.totalorder %v1733_v51, 2 }
 0x179   : > { %v1632_v19 = vxor.u32 2147483648, %v2637_v58  ;;  %v1741_v55 = vsel %vm3674_vm13, %v1737_v25, %v1740_v12  ;;  %vm1630_vm6 = vcmp.lt.s32.totalorder %v1629_v49, 2  ;;  %vm2046_vm9 = vcmp.lt.s32.totalorder %v2045_v63, 2 }
 0x17a   : > { %v1427_v18 = vsel %vm1425_vm3, %v2631_v3, %v1426_v13  ;;  %v1430_v39 = vsel %vm1428_vm5, %v1429_v26, %v2633_v21  ;;  %v1841_v20 = vsel %vm1839_vm14, %v2631_v3, %v1426_v13  ;;  %v1844_v59 = vsel %vm1842_vm8, %v1429_v26, %v2633_v21 }
 0x17b   : > { %v1633_v33 = vsel %vm1631_vm7, %v2635_v41, %v1632_v19  ;;  %v1636_v35 = vsel %vm1634_vm10, %v1635_v10, %v2637_v58  ;;  %v2049_v11 = vsel %vm2047_vm11, %v2635_v41, %v1632_v19  ;;  %v2052_v50 = vsel %vm2050_vm2, %v1635_v10, %v2637_v58 }
 0x17c   : > { %vm1422_vm4 = vweird.f32 %v3143_v60  ;;  %vm1525_vm12 = vweird.f32 %v3139_v48  ;;  %vm3675_vm0 = vcmp.lt.s32.totalorder %v3562_v36, 2  ;;  %vm3676_vm1 = vweird.f32 %v3137_v24 }
 0x17d   : > { %v1534_v23 = vsel %vm3675_vm0, %v1530_v1, %v1533_v29  ;;  %v1329_v27 = vsel %vm3676_vm1, nan, %v1328_v7  ;;  %vm3677_vm3 = vmmov %vm3676_vm1  ;;  %v1949_v32 = vsel %vm1942_vm15, %v1945_v31, %v1948_v28  ;;  %vm1628_vm8 = vweird.f32 %v3146_v2 }
 0x17e   : > { %v1742_v40 = vsel %vm3677_vm3, nan, %v1741_v55  ;;  %vm3678_vm11 = vcmp.lt.s32.totalorder %v3568_v37, 2  ;;  %vm3679_vm14 = vcmp.lt.s32.totalorder %v3570_v46, 2  ;;  %v1637_v56 = vsel %vm1630_vm6, %v1633_v33, %v1636_v35 }
 0x17f   : > { %v1431_v14 = vsel %vm3678_vm11, %v1427_v18, %v1430_v39  ;;  %v1845_v4 = vsel %vm3679_vm14, %v1841_v20, %v1844_v59  ;;  %v2053_v45 = vsel %vm2046_vm9, %v2049_v11, %v2052_v50  ;;  %v1535_v43 = vsel %vm1525_vm12, nan, %v1534_v23 }
 0x180   : > { %v1432_v8 = vsel %vm1422_vm4, nan, %v1431_v14  ;;  %v1846_v51 = vsel %vm1422_vm4, nan, %v1845_v4  ;;  %v1950_v36 = vsel %vm1525_vm12, nan, %v1949_v32  ;;  %v1638_v37 = vsel %vm1628_vm8, nan, %v1637_v56 }
 0x181   : > { %v2054_v46 = vsel %vm1628_vm8, nan, %v2053_v45  ;;  %v2670_v59 = vmov 1966171168  }
 0x182   : > { %v2276_v33 = vunpack.c.l.s4 %v2670_v59 }
 0x1d7   : > { %v2128_v16 = vpop.f32.mrf.mxu0  ;;  %v2205_v57 = vpop.f32.mrf.mxu1 }
 0x1d8   : > { %v2216_v9 = vmul.f32 %v2128_v16, %v1329_v27  ;;  %v2248_v24 = vmul.f32 %v2128_v16, %v1742_v40  ;;  %v2220_v22 = vmul.f32 %v2205_v57, %v1742_v40  ;;  %v2244_v62 = vmul.f32 %v2205_v57, %v1329_v27 }
 0x1d9   : > { %v2130_v53 = vpop.f32.mrf.mxu0  ;;  %v2207_v47 = vpop.f32.mrf.mxu1  ;;  %v2277_v16 = vunpack.c.0.s8 %v2276_v33 }
 0x1da   : > { %v2224_v61 = vsub.f32 %v2216_v9, %v2220_v22  ;;  %v2252_v30 = vadd.f32 %v2248_v24, %v2244_v62  ;;  %v2217_v52 = vmul.f32 %v2130_v53, %v1432_v8  ;;  %v2249_v15 = vmul.f32 %v2130_v53, %v1846_v51 }
 0x1db   : > { %v2134_v42 = vpop.f32.mrf.mxu0  ;;  %v2211_v38 = vpop.f32.mrf.mxu1  ;;  %v2221_v21 = vmul.f32 %v2207_v47, %v1846_v51  ;;  %v2245_v34 = vmul.f32 %v2207_v47, %v1432_v8  ;;  %v2280_v24 = vsub.s32 %v2277_v16, %v2739_v6 }
 0x1dc   : > { %v2218_v44 = vmul.f32 %v2134_v42, %v1535_v43  ;;  %v2250_v17 = vmul.f32 %v2134_v42, %v1950_v36  ;;  %v2222_v60 = vmul.f32 %v2211_v38, %v1950_v36  ;;  %v2246_v3 = vmul.f32 %v2211_v38, %v1535_v43 }
 0x1dd   : > { %v2136_v48 = vpop.f32.mrf.mxu0  ;;  %v2213_v41 = vpop.f32.mrf.mxu1  ;;  %v2225_v2 = vsub.f32 %v2217_v52, %v2221_v21  ;;  %v2253_v5 = vadd.f32 %v2249_v15, %v2245_v34 }
 0x1de   : > { %v2226_v54 = vsub.f32 %v2218_v44, %v2222_v60  ;;  %v2254_v58 = vadd.f32 %v2250_v17, %v2246_v3  ;;  %v2219_v49 = vmul.f32 %v2136_v48, %v1638_v37  ;;  %v2251_v63 = vmul.f32 %v2136_v48, %v2054_v46 }
 0x1df   : > { %v2223_v0 = vmul.f32 %v2213_v41, %v2054_v46  ;;  %v2247_v12 = vmul.f32 %v2213_v41, %v1638_v37 }
 0x1e0   : > { %v2228_v29 = vadd.f32 %v2226_v54, %v2224_v61  ;;  %v2256_v28 = vadd.f32 %v2254_v58, %v2252_v30  ;;  %v3680_v61 = vlaneseq }
 0x1e1   : > { %v2227_v25 = vsub.f32 %v2219_v49, %v2223_v0  ;;  %v2255_v13 = vadd.f32 %v2251_v63, %v2247_v12 }
 0x1e2   : > { %v2229_v26 = vrot.slane %v2228_v29, 4  ;;  %v2257_v1 = vrot.slane %v2256_v28, 4  ;;  %vm2292_vm15 = vcmp.lt.s32.totalorder %v3680_v61, 256 }
 0x1e3   : > { %v2235_v31 = vadd.f32 %v2227_v25, %v2225_v2  ;;  %v2263_v19 = vadd.f32 %v2255_v13, %v2253_v5 }
 0x1e4   : > { %v2230_v10 = vadd.f32 %v2229_v26, %v2228_v29  ;;  %v2258_v7 = vadd.f32 %v2257_v1, %v2256_v28 }
 0x1e5   : > { %v2236_v55 = vrot.slane %v2235_v31, 4  ;;  %v2264_v18 = vrot.slane %v2263_v19, 4 }
 0x1e6   : > { %v2231_v39 = vrot.slane %v2230_v10, 2  ;;  %v2259_v20 = vrot.slane %v2258_v7, 2 }
 0x1e7   : > { %v2237_v35 = vadd.f32 %v2236_v55, %v2235_v31  ;;  %v2265_v11 = vadd.f32 %v2264_v18, %v2263_v19 }
 0x1e8   : > { %v2232_v50 = vadd.f32 %v2231_v39, %v2230_v10  ;;  %v2260_v23 = vadd.f32 %v2259_v20, %v2258_v7 }
 0x1e9   : > { %v2238_v27 = vrot.slane %v2237_v35, 2  ;;  %v2266_v40 = vrot.slane %v2265_v11, 2 }
 0x1ea   : > { %v2261_v32 = vrot.slane %v2260_v23, 1  ;;  %v2233_v57 = vrot.slane %v2232_v50, 1 }
 0x1eb   : > { %v2239_v14 = vadd.f32 %v2238_v27, %v2237_v35  ;;  %v2267_v4 = vadd.f32 %v2266_v40, %v2265_v11 }
 0x1ec   : > { %v2262_v56 = vadd.f32 %v2261_v32, %v2260_v23  ;;  %v2234_v22 = vadd.f32 %v2233_v57, %v2232_v50 }
 0x1ed   : > { %v2240_v45 = vrot.slane %v2239_v14, 1  ;;  %v2268_v9 = vrot.slane %v2267_v4, 1 }
 0x1ee   : > { %v2270_v47 = vsub.f32 0.0, %v2262_v56 }
 0x1ef   : > { %v2241_v62 = vadd.f32 %v2240_v45, %v2239_v14  ;;  %v2269_v53 = vadd.f32 %v2268_v9, %v2267_v4 }
 0x1f1   : > { %v2271_v8 = vsub.f32 0.0, %v2269_v53  ;;  %v2274_v51 = vcombine.low %v2234_v22, %v2241_v62 }
 0x1f3   : > { %v2281_v43 = vrot.slane %v2274_v51, %v2280_v24  ;;  %v2297_v36 = vcombine.low %v2270_v47, %v2271_v8 }
 0x1f5   : > { %v2288_v30 = vrot.slane %v2281_v43, %v2280_v24  ;;  %v2304_v42 = vrot.slane %v2297_v36, %v2280_v24 }
 0x1f7   : > { %2294 = vst.msk [vmem:[%s322_s20] sm:$0x3] %vm2292_vm15, %v2288_v30  ;;  %v2311_v6 = vrot.slane %v2304_v42, %v2280_v24 }
 0x1f9   : > { %2313 = vst.msk [vmem:[%s331_s27] sm:$0x3] %vm2292_vm15, %v2311_v6 }
 0x1fa PF: > { %s17_s23 = sadd.s32 1, %s2660_s23   ;;  %s3681_s21 = smov %s2656_s22 }
 0x1fb   : > { %p14_p5 = scmp.ge.s32.totalorder %s17_s23, 4   ;;  %s3682_s22 = smov %s3684_s24 }
 0x1fd   :  { %16 = sbr.rel (!%p14_p5) target bundleno = 2 (0x2), region = 88 }

</bundles_post_ra>
